<compile_context>
chip_gen: v7x
topology: tpu7x:2x2x1
jax: 0.10.0
libtpu: 0.0.40
codegen_flags: <defaults>
</compile_context>

<pallas_src>
import math
import functools

import jax
import jax.numpy as jnp
from jax.experimental import pallas as pl
from jax.experimental.pallas import tpu as pltpu


LANE = 128      # vreg lane width: output class dim padded to this for lane-dense stores
SUBLANE = 8     # vreg sublane height: batch tile is a multiple of this


def _round_up(x, m):
    return (x + m - 1) // m * m


# ----------------------------- fused Pallas kernel -----------------------------

def _face_model_kernel(patches_ref,   # VMEM [tb, HW, CK]  bf16   im2col patches (this batch block)
                       wc_ref,        # VMEM [CK, COUT]    bf16   conv weight (flattened + transposed)
                       bc_ref,        # VMEM [1, COUT]     f32
                       wf_ref,        # VMEM [COUT, D]     f32    fc weight (transposed)
                       bf_ref,        # VMEM [1, D]        f32
                       wn_ref,        # VMEM [D, tn]       f32    pre-normalized head weight^T, NC tile j
                       label_ref,     # VMEM [tb, 1]       int32
                       out_ref,       # VMEM [tb, tn]      f32
                       fn_ref,        # VMEM scratch [tb, D] f32  normalized features, cached over NC tiles
                       *, cos_m, sin_m, th, mm, scale, tb, hw, hc, tn):
    j = pl.program_id(1)
    ck = wc_ref.shape[0]
    cout = wc_ref.shape[1]

    # ---- backbone: only on the first NC tile; cached in fn_ref for j > 0 ----
    @pl.when(j == 0)
    def _backbone():
        wc = wc_ref[...]
        bc = bc_ref[...]

        def conv_pool(chunk):                              # chunk: [tb, hc, CK] bf16
            x2d = chunk.reshape(tb * hc, ck)               # sublane-major merge (tile-aligned)
            conv = jnp.dot(x2d, wc, preferred_element_type=jnp.float32)   # MXU
            conv = jnp.maximum(conv + bc, 0.0)             # bias + ReLU (VPU)
            return jnp.sum(conv.reshape(tb, hc, cout), axis=1)            # [tb, COUT] f32

        n_chunks = hw // hc
        if n_chunks == 1:
            pooled = conv_pool(patches_ref[...])
        else:
            def body(c, acc):
                start = pl.multiple_of(c * hc, hc)
                return acc + conv_pool(patches_ref[:, pl.ds(start, hc), :])
            pooled = jax.lax.fori_loop(0, n_chunks, body,
                                       jnp.zeros((tb, cout), jnp.float32))
        pooled = pooled * (1.0 / hw)                       # global average pool

        feat = jnp.dot(pooled, wf_ref[...],
                       preferred_element_type=jnp.float32) + bf_ref[...]   # [tb, D] f32
        fn_ref[...] = feat * jax.lax.rsqrt(
            jnp.sum(feat * feat, axis=-1, keepdims=True) + 1e-12)

    # ---- ArcFace head on class tile j (f32 for parity near the margin threshold) ----
    cos = jnp.dot(fn_ref[...], wn_ref[...], preferred_element_type=jnp.float32)  # [tb, tn]
    cos = jnp.clip(cos, -1.0, 1.0)
    sin = jnp.sqrt(jnp.maximum(1.0 - cos * cos, 0.0))
    phi = cos * cos_m - sin * sin_m                        # cos(theta + m)
    phi = jnp.where(cos > th, phi, cos - mm)               # standard ArcFace fallback

    # One-hot margin selection. Padded batch rows carry label 0, so they get a spurious
    # margin at class 0 -- harmless, those rows are sliced off by the wrapper.
    cls = j * tn + jax.lax.broadcasted_iota(jnp.int32, (tb, tn), 1)
    onehot = cls == label_ref[...]
    out_ref[...] = (scale * jnp.where(onehot, phi, cos)).astype(out_ref.dtype)


# ------------------------------- JAX glue --------------------------------------

def _im2col_3x3(x):
    """NCHW [B,C,H,W] -> patches [B, H*W, C*9], 'same' zero padding (C-major taps)."""
    B, C, H, W = x.shape
    xp = jnp.pad(x, ((0, 0), (0, 0), (1, 1), (1, 1)))
    taps = [xp[:, :, i:i + H, j:j + W] for i in range(3) for j in range(3)]
    p = jnp.stack(taps, axis=0)                # [9, B, C, H, W]
    p = jnp.transpose(p, (1, 3, 4, 2, 0))      # [B, H, W, C, 9] -> matches conv_w.reshape(Cout, C*9)
    return p.reshape(B, H * W, C * 9)


def _pick_batch_tile(B):
    """Batch rows per grid block: >= 2 blocks when possible (v7x: 2 TCs), capped at 128."""
    Bp = _round_up(B, SUBLANE)
    if Bp <= 2 * SUBLANE:
        return Bp
    return min(128, _round_up((Bp + 1) // 2, SUBLANE))


def _pick_hw_chunk(HW, tb, cout, budget_bytes=2 << 20):
    """HW chunk so the per-chunk f32 conv intermediate stays ~<= budget (lane-padded)."""
    lanes = _round_up(cout, LANE)
    hc = HW
    while (tb * hc * lanes * 4 > budget_bytes and hc % 2 == 0
           and (hc // 2) % SUBLANE == 0):
        hc //= 2
    return hc


def _resident_kwargs():
    """Single-buffer grid-invariant operands (halves their VMEM); fall back if unsupported."""
    try:
        pl.BlockSpec((8, 128), lambda i, j: (0, 0), pipeline_mode=pl.Buffered(1))
        return {"pipeline_mode": pl.Buffered(1)}
    except Exception:  # older jax without pipeline_mode on BlockSpec
        return {}


def face_model_forward(data, label, params, *, margin=0.5, scale=64.0):
    """data: NCHW float32, label: [B] int32 -> pred [B, NC] float32."""
    B, C, H, W = data.shape
    Cout = params["conv_w"].shape[0]
    D = params["fc_w"].shape[0]
    NC = params["head_w"].shape[0]
    HW = H * W
    CK = C * 9

    tb = _pick_batch_tile(B)
    Bp = _round_up(B, tb)
    NCp = _round_up(NC, LANE)            # pad classes -> lane-dense output store
    tn = math.gcd(NCp, 4 * LANE)         # 128..512 class tile, always divides NCp
    hc = _pick_hw_chunk(HW, tb, Cout)
    grid = (Bp // tb, NCp // tn)

    f32, bf16 = jnp.float32, jnp.bfloat16

    # ---- host-side layout plumbing (transposes / padding / weight normalization) ----
    data_p = jnp.pad(data.astype(f32), ((0, Bp - B), (0, 0), (0, 0), (0, 0)))
    patches = _im2col_3x3(data_p).astype(bf16)                       # [Bp, HW, CK] bf16

    wc = params["conv_w"].reshape(Cout, CK).T.astype(bf16)           # [CK, Cout]
    bc = params["conv_b"].reshape(1, Cout).astype(f32)
    wf = params["fc_w"].T.astype(f32)                                # [Cout, D]
    bfc = params["fc_b"].reshape(1, D).astype(f32)

    hw_ = params["head_w"].astype(f32)                               # [NC, D]
    wn = hw_ * jax.lax.rsqrt(jnp.sum(hw_ * hw_, axis=-1, keepdims=True) + 1e-12)
    wn = jnp.pad(wn.T, ((0, 0), (0, NCp - NC)))                      # [D, NCp] f32, pre-normalized

    labels_p = jnp.zeros((Bp, 1), jnp.int32).at[:B, 0].set(label.astype(jnp.int32))

    kernel = functools.partial(
        _face_model_kernel,
        cos_m=float(math.cos(margin)), sin_m=float(math.sin(margin)),
        th=float(math.cos(math.pi - margin)),
        mm=float(math.sin(math.pi - margin) * margin),
        scale=float(scale), tb=tb, hw=HW, hc=hc, tn=tn)

    const = _resident_kwargs()
    in_specs = [
        pl.BlockSpec((tb, HW, CK), lambda i, j: (i, 0, 0)),           # patches (per batch block)
        pl.BlockSpec((CK, Cout), lambda i, j: (0, 0), **const),       # conv weight (resident)
        pl.BlockSpec((1, Cout), lambda i, j: (0, 0), **const),        # conv bias  (resident)
        pl.BlockSpec((Cout, D), lambda i, j: (0, 0), **const),        # fc weight  (resident)
        pl.BlockSpec((1, D), lambda i, j: (0, 0), **const),           # fc bias    (resident)
        pl.BlockSpec((D, tn), lambda i, j: (0, j)),                   # head weight tile (streams over NC)
        pl.BlockSpec((tb, 1), lambda i, j: (i, 0)),                   # labels
    ]
    out_specs = pl.BlockSpec((tb, tn), lambda i, j: (i, j))

    # explicit VMEM budget (v7x: 64 MiB physical vs 128 MiB on v5e/v6e)
    conv_chunk = tb * hc * _round_up(Cout, LANE) * 4
    vmem_est = (2 * tb * HW * CK * 2 + (CK * Cout + Cout * D) * 4 + 2 * D * tn * 4
                + 2 * tb * tn * 4 + tb * D * 4 + 2 * conv_chunk)
    vmem_limit = int(min(96 * 2 ** 20, max(32 * 2 ** 20, 2 * vmem_est)))

    # advisory cost estimate for XLA's scheduler
    flops = 2 * (Bp * HW * CK * Cout + Bp * Cout * D + Bp * D * NCp)
    bytes_accessed = (patches.size * 2 + wc.size * 2 + wn.size * 4 + wf.size * 4
                      + (bc.size + bfc.size) * 4 + labels_p.size * 4 + Bp * NCp * 4)
    cost = pl.CostEstimate(flops=int(flops), transcendentals=int(Bp * (1 + NCp)),
                           bytes_accessed=int(bytes_accessed))

    pred_p = pl.pallas_call(
        kernel,
        out_shape=jax.ShapeDtypeStruct((Bp, NCp), jnp.float32),
        grid=grid,
        in_specs=in_specs,
        out_specs=out_specs,
        scratch_shapes=[pltpu.VMEM((tb, D), jnp.float32)],            # cached normalized features
        compiler_params=pltpu.CompilerParams(
            # Batch blocks shard across TensorCores; the NC axis must stay "arbitrary"
            # because the feature cache in scratch is reused across its steps.
            dimension_semantics=("parallel", "arbitrary"),
            vmem_limit_bytes=vmem_limit),
        cost_estimate=cost,
    )(patches, wc, bc, wf, bfc, wn, labels_p)

    return pred_p[:B, :NC]


def init_params(key, *, c_in=4, c_out=8, emb_dim=32, num_classes=16):
    k1, k2, k3, k4, k5 = jax.random.split(key, 5)
    return {
        "conv_w": 0.1 * jax.random.normal(k1, (c_out, c_in, 3, 3), jnp.float32),
        "conv_b": 0.1 * jax.random.normal(k2, (c_out,), jnp.float32),
        "fc_w": 0.1 * jax.random.normal(k3, (emb_dim, c_out), jnp.float32),
        "fc_b": 0.1 * jax.random.normal(k4, (emb_dim,), jnp.float32),
        "head_w": 0.1 * jax.random.normal(k5, (num_classes, emb_dim), jnp.float32),
    }


if __name__ == "__main__":
    key = jax.random.PRNGKey(0)
    kd, kl, kp = jax.random.split(key, 3)

    B, C, H, W = 2, 4, 16, 16
    NUM_CLASSES = 16

    data = jax.random.normal(kd, (B, C, H, W), jnp.float32)          # NCHW, like PyTorch
    label = jax.random.randint(kl, (B,), 0, NUM_CLASSES, jnp.int32)
    params = init_params(kp, c_in=C, c_out=8, emb_dim=32, num_classes=NUM_CLASSES)

    pred = jax.jit(face_model_forward)(data, label, params)
    jax.block_until_ready(pred)
    assert pred.shape == (B, NUM_CLASSES) and pred.dtype == jnp.float32
    print("KERNEL_OK")
</pallas_src>

<mosaic_0001>
module attributes {stable_mosaic.version = 11 : i64} {
  func.func @_face_model_kernel(%arg0: i32, %arg1: i32, %arg2: memref<8x256x36xbf16, #tpu.memory_space<vmem>>, %arg3: memref<36x8xbf16, #tpu.memory_space<vmem>>, %arg4: memref<1x8xf32, #tpu.memory_space<vmem>>, %arg5: memref<8x32xf32, #tpu.memory_space<vmem>>, %arg6: memref<1x32xf32, #tpu.memory_space<vmem>>, %arg7: memref<32x128xf32, #tpu.memory_space<vmem>>, %arg8: memref<8x1xi32, #tpu.memory_space<vmem>>, %arg9: memref<8x128xf32, #tpu.memory_space<vmem>>, %arg10: memref<8x32xf32, #tpu.memory_space<vmem>>) attributes {dimension_semantics = [#tpu.dimension_semantics<parallel>, #tpu.dimension_semantics<arbitrary>], iteration_bounds = array<i64: 1, 1>, scalar_prefetch = 0 : i64, scratch_operands = 1 : i64, tpu.core_type = #tpu.core_type<tc>, window_params = [{transform_indices = @transform_0, window_bounds = array<i64: 8, 256, 36>}, {pipeline_mode = #tpu.pipeline_mode<synchronous>, transform_indices = @transform_1, window_bounds = array<i64: 36, 8>}, {pipeline_mode = #tpu.pipeline_mode<synchronous>, transform_indices = @transform_2, window_bounds = array<i64: 1, 8>}, {pipeline_mode = #tpu.pipeline_mode<synchronous>, transform_indices = @transform_3, window_bounds = array<i64: 8, 32>}, {pipeline_mode = #tpu.pipeline_mode<synchronous>, transform_indices = @transform_4, window_bounds = array<i64: 1, 32>}, {transform_indices = @transform_5, window_bounds = array<i64: 32, 128>}, {transform_indices = @transform_6, window_bounds = array<i64: 8, 1>}, {transform_indices = @transform_7, window_bounds = array<i64: 8, 128>}]} {
    %c0_i32 = arith.constant 0 : i32
    %0 = arith.cmpi eq, %arg1, %c0_i32 : i32
    %1 = arith.extui %0 : i1 to i32
    %c0_i32_0 = arith.constant 0 : i32
    %2 = arith.cmpi ne, %1, %c0_i32_0 : i32
    scf.if %2 {
      %c0_17 = arith.constant 0 : index
      %c0_18 = arith.constant 0 : index
      %37 = vector.load %arg3[%c0_17, %c0_18] : memref<36x8xbf16, #tpu.memory_space<vmem>>, vector<36x8xbf16>
      %c0_19 = arith.constant 0 : index
      %c0_20 = arith.constant 0 : index
      %38 = vector.load %arg4[%c0_19, %c0_20] : memref<1x8xf32, #tpu.memory_space<vmem>>, vector<1x8xf32>
      %c0_21 = arith.constant 0 : index
      %c0_22 = arith.constant 0 : index
      %c0_23 = arith.constant 0 : index
      %39 = vector.load %arg2[%c0_21, %c0_22, %c0_23] : memref<8x256x36xbf16, #tpu.memory_space<vmem>>, vector<8x256x36xbf16>
      %40 = vector.shape_cast %39 : vector<8x256x36xbf16> to vector<2048x36xbf16>
      %cst_24 = arith.constant dense<0.000000e+00> : vector<2048x8xf32>
      %41 = tpu.matmul %40, %37, %cst_24 {dimension_numbers = #tpu.dot_dimension_numbers<[1], [0], [0], [1], [0, 0, 1, 1], [], []>} : vector<2048x36xbf16>, vector<36x8xbf16>, vector<2048x8xf32> -> vector<2048x8xf32>
      %42 = vector.broadcast %38 : vector<1x8xf32> to vector<2048x8xf32>
      %43 = arith.addf %41, %42 : vector<2048x8xf32>
      %cst_25 = arith.constant 0.000000e+00 : f32
      %44 = vector.broadcast %cst_25 : f32 to vector<2048x8xf32>
      %45 = arith.maximumf %43, %44 : vector<2048x8xf32>
      %46 = vector.shape_cast %45 : vector<2048x8xf32> to vector<8x256x8xf32>
      %cst_26 = arith.constant dense<0.000000e+00> : vector<8x8xf32>
      %47 = vector.multi_reduction <add>, %46, %cst_26 [1] : vector<8x256x8xf32> to vector<8x8xf32>
      %cst_27 = arith.constant 3.906250e-03 : f32
      %48 = vector.broadcast %cst_27 : f32 to vector<8x8xf32>
      %49 = arith.mulf %47, %48 : vector<8x8xf32>
      %c0_28 = arith.constant 0 : index
      %c0_29 = arith.constant 0 : index
      %50 = vector.load %arg5[%c0_28, %c0_29] : memref<8x32xf32, #tpu.memory_space<vmem>>, vector<8x32xf32>
      %cst_30 = arith.constant dense<0.000000e+00> : vector<8x32xf32>
      %51 = tpu.matmul %49, %50, %cst_30 {dimension_numbers = #tpu.dot_dimension_numbers<[1], [0], [0], [1], [0, 0, 1, 1], [], []>} : vector<8x8xf32>, vector<8x32xf32>, vector<8x32xf32> -> vector<8x32xf32>
      %c0_31 = arith.constant 0 : index
      %c0_32 = arith.constant 0 : index
      %52 = vector.load %arg6[%c0_31, %c0_32] : memref<1x32xf32, #tpu.memory_space<vmem>>, vector<1x32xf32>
      %53 = vector.broadcast %52 : vector<1x32xf32> to vector<8x32xf32>
      %54 = arith.addf %51, %53 : vector<8x32xf32>
      %55 = arith.mulf %54, %54 : vector<8x32xf32>
      %cst_33 = arith.constant dense<0.000000e+00> : vector<8xf32>
      %56 = vector.multi_reduction <add>, %55, %cst_33 [1] : vector<8x32xf32> to vector<8xf32>
      %57 = vector.shape_cast %56 : vector<8xf32> to vector<8x1xf32>
      %cst_34 = arith.constant 9.99999996E-13 : f32
      %58 = vector.broadcast %cst_34 : f32 to vector<8x1xf32>
      %59 = arith.addf %57, %58 : vector<8x1xf32>
      %60 = math.rsqrt %59 : vector<8x1xf32>
      %61 = vector.broadcast %60 : vector<8x1xf32> to vector<8x32xf32>
      %62 = arith.mulf %54, %61 : vector<8x32xf32>
      %c0_35 = arith.constant 0 : index
      %c0_36 = arith.constant 0 : index
      %63 = vector.load %arg10[%c0_35, %c0_36] : memref<8x32xf32, #tpu.memory_space<vmem>>, vector<8x32xf32>
      tpu.vector_store %arg10[%c0_35, %c0_36], %62 {strides = array<i32>} : memref<8x32xf32, #tpu.memory_space<vmem>>, vector<8x32xf32>,
    } else {
    }
    %c0 = arith.constant 0 : index
    %c0_1 = arith.constant 0 : index
    %3 = vector.load %arg10[%c0, %c0_1] : memref<8x32xf32, #tpu.memory_space<vmem>>, vector<8x32xf32>
    %c0_2 = arith.constant 0 : index
    %c0_3 = arith.constant 0 : index
    %4 = vector.load %arg7[%c0_2, %c0_3] : memref<32x128xf32, #tpu.memory_space<vmem>>, vector<32x128xf32>
    %cst = arith.constant dense<0.000000e+00> : vector<8x128xf32>
    %5 = tpu.matmul %3, %4, %cst {dimension_numbers = #tpu.dot_dimension_numbers<[1], [0], [0], [1], [0, 0, 1, 1], [], []>} : vector<8x32xf32>, vector<32x128xf32>, vector<8x128xf32> -> vector<8x128xf32>
    %cst_4 = arith.constant -1.000000e+00 : f32
    %cst_5 = arith.constant 1.000000e+00 : f32
    %6 = vector.broadcast %cst_4 : f32 to vector<8x128xf32>
    %7 = arith.maximumf %6, %5 : vector<8x128xf32>
    %8 = vector.broadcast %cst_5 : f32 to vector<8x128xf32>
    %9 = arith.minimumf %8, %7 : vector<8x128xf32>
    %10 = arith.mulf %9, %9 : vector<8x128xf32>
    %cst_6 = arith.constant 1.000000e+00 : f32
    %11 = vector.broadcast %cst_6 : f32 to vector<8x128xf32>
    %12 = arith.subf %11, %10 : vector<8x128xf32>
    %cst_7 = arith.constant 0.000000e+00 : f32
    %13 = vector.broadcast %cst_7 : f32 to vector<8x128xf32>
    %14 = arith.maximumf %12, %13 : vector<8x128xf32>
    %15 = math.sqrt %14 : vector<8x128xf32>
    %cst_8 = arith.constant 0.87758255 : f32
    %16 = vector.broadcast %cst_8 : f32 to vector<8x128xf32>
    %17 = arith.mulf %9, %16 : vector<8x128xf32>
    %cst_9 = arith.constant 0.47942555 : f32
    %18 = vector.broadcast %cst_9 : f32 to vector<8x128xf32>
    %19 = arith.mulf %15, %18 : vector<8x128xf32>
    %20 = arith.subf %17, %19 : vector<8x128xf32>
    %cst_10 = arith.constant -0.87758255 : f32
    %21 = vector.broadcast %cst_10 : f32 to vector<8x128xf32>
    %22 = arith.cmpf ogt, %9, %21 : vector<8x128xf32>
    %cst_11 = arith.constant 0.239712775 : f32
    %23 = vector.broadcast %cst_11 : f32 to vector<8x128xf32>
    %24 = arith.subf %9, %23 : vector<8x128xf32>
    %25 = arith.select %22, %20, %24 : vector<8x128xi1>, vector<8x128xf32>
    %c128_i32 = arith.constant 128 : i32
    %26 = arith.muli %arg1, %c128_i32 : i32
    %27 = tpu.iota {dimensions = array<i32: 1>} : vector<8x128xi32>
    %28 = vector.broadcast %26 : i32 to vector<8x128xi32>
    %29 = arith.addi %28, %27 : vector<8x128xi32>
    %c0_12 = arith.constant 0 : index
    %c0_13 = arith.constant 0 : index
    %30 = vector.load %arg8[%c0_12, %c0_13] : memref<8x1xi32, #tpu.memory_space<vmem>>, vector<8x1xi32>
    %31 = vector.broadcast %30 : vector<8x1xi32> to vector<8x128xi32>
    %32 = arith.cmpi eq, %29, %31 : vector<8x128xi32>
    %33 = arith.select %32, %25, %9 : vector<8x128xi1>, vector<8x128xf32>
    %cst_14 = arith.constant 6.400000e+01 : f32
    %34 = vector.broadcast %cst_14 : f32 to vector<8x128xf32>
    %35 = arith.mulf %34, %33 : vector<8x128xf32>
    %c0_15 = arith.constant 0 : index
    %c0_16 = arith.constant 0 : index
    %36 = vector.load %arg9[%c0_15, %c0_16] : memref<8x128xf32, #tpu.memory_space<vmem>>, vector<8x128xf32>
    tpu.vector_store %arg9[%c0_15, %c0_16], %35 {strides = array<i32>} : memref<8x128xf32, #tpu.memory_space<vmem>>, vector<8x128xf32>,
    return
  }
  func.func @transform_0(%arg0: i32, %arg1: i32) -> (i32, i32, i32) {
    %c0_i32 = arith.constant 0 : i32
    %c0_i32_0 = arith.constant 0 : i32
    %c0_i32_1 = arith.constant 0 : i32
    return %arg0, %c0_i32, %c0_i32_0 : i32, i32, i32
  }
  func.func @transform_1(%arg0: i32, %arg1: i32) -> (i32, i32) {
    %c0_i32 = arith.constant 0 : i32
    %c0_i32_0 = arith.constant 0 : i32
    %c0_i32_1 = arith.constant 0 : i32
    return %c0_i32, %c0_i32_0 : i32, i32
  }
  func.func @transform_2(%arg0: i32, %arg1: i32) -> (i32, i32) {
    %c0_i32 = arith.constant 0 : i32
    %c0_i32_0 = arith.constant 0 : i32
    %c0_i32_1 = arith.constant 0 : i32
    return %c0_i32, %c0_i32_0 : i32, i32
  }
  func.func @transform_3(%arg0: i32, %arg1: i32) -> (i32, i32) {
    %c0_i32 = arith.constant 0 : i32
    %c0_i32_0 = arith.constant 0 : i32
    %c0_i32_1 = arith.constant 0 : i32
    return %c0_i32, %c0_i32_0 : i32, i32
  }
  func.func @transform_4(%arg0: i32, %arg1: i32) -> (i32, i32) {
    %c0_i32 = arith.constant 0 : i32
    %c0_i32_0 = arith.constant 0 : i32
    %c0_i32_1 = arith.constant 0 : i32
    return %c0_i32, %c0_i32_0 : i32, i32
  }
  func.func @transform_5(%arg0: i32, %arg1: i32) -> (i32, i32) {
    %c0_i32 = arith.constant 0 : i32
    %c0_i32_0 = arith.constant 0 : i32
    return %c0_i32, %arg1 : i32, i32
  }
  func.func @transform_6(%arg0: i32, %arg1: i32) -> (i32, i32) {
    %c0_i32 = arith.constant 0 : i32
    %c0_i32_0 = arith.constant 0 : i32
    return %arg0, %c0_i32 : i32, i32
  }
  func.func @transform_7(%arg0: i32, %arg1: i32) -> (i32, i32) {
    %c0_i32 = arith.constant 0 : i32
    return %arg0, %arg1 : i32, i32
  }
}

</mosaic_0001>

<bundles_post_ra>
// kernel: face_model_forward.1
= control target key start
LH: loop header
LB: loop body
LE: loop exit
PB: predicated region body
PF: predicated region fallthrough
CT: control target
= control target key end

     0   :  { %vm954_vm0 = vcmask 293888   ;;  %vm1339_vm1 = vcmask 1041408   ;;  %vm2656_vm2 = vcmask 64512   ;;  %vm3233_vm3 = vcmask 1041409   ;;  %s5650_s1 = inlined_call_operand.vmem [shape: bf16[36,8], index: 1, kind: input, shape index: {}]   ;;  %s5651_s0 = inlined_call_operand.vmem [shape: bf16[8,256,36], index: 0, kind: input, shape index: {}]   ;;  %s5652_s3 = inlined_call_operand.vmem [shape: f32[8,32], index: 3, kind: input, shape index: {}]   ;;  %s5653_s2 = inlined_call_operand.vmem [shape: f32[1,8], index: 2, kind: input, shape index: {}]   ;;  %s5654_s4 = inlined_call_operand.vmem [shape: f32[1,32], index: 4, kind: input, shape index: {}]   ;;  %s5655_s5 = inlined_call_operand.vmem [shape: f32[32,128], index: 5, kind: input, shape index: {}]   ;;  %s5656_s6 = inlined_call_operand.vmem [shape: s32[8,1], index: 6, kind: input, shape index: {}]   ;;  %s5657_s7 = inlined_call_operand.vmem [shape: f32[8,128], index: 7, kind: output, shape index: {}]  }
   0x1   :  { %v4142_v0 = vld [vmem:[%s5650_s1] sm:$0xff]   ;;  %v4143_v1 = vld [vmem:[%s5650_s1 + $0x8] sm:$0xff]   ;;  %v4144_v2 = vld [vmem:[%s5650_s1 + $0x10] ss:$0 sps:$4 sm:$0x33]   ;;  %vm3235_vm4 = vcmask 1042434  }
   0x2   :  { %3845 = vmatprep.subr.bf16.mxu0 %v4142_v0  ;;  %v4145_v3 = vld [vmem:[%s5651_s0] sm:$0xff]   ;;  %4129 = vmatprep.subr.bf16.mxu1 %v4142_v0  ;;  %v1341_v4 = vsel %vm1339_vm1, %v4144_v2, 0  ;;  %v4146_v5 = vld [vmem:[%s5651_s0 + $0x8] sm:$0xff]   ;;  %v4147_v6 = vld [vmem:[%s5651_s0 + $0x10] sm:$0xff]   ;;  %vm4280_vm5 = vmmov 0   ;;  %vm3237_vm6 = vcmask 1043459  }
   0x3   :  { %3846 = vmatpush3.bf16.msra.mxu0 %v4142_v0  ;;  %4132 = vmatpush3.bf16.msra.mxu1 %v4142_v0  ;;  %v4148_v7 = vld [vmem:[%s5651_s0 + $0x18] sm:$0xff]   ;;  %v4149_v8 = vld [vmem:[%s5651_s0 + $0x20] sm:$0xff]   ;;  %v4161_v9 = vld [vmem:[%s5651_s0 + $0x210] sm:$0xff]   ;;  %vm3239_vm7 = vcmask 1044484   ;;  %vm3241_vm8 = vcmask 1045509   ;;  %vm3243_vm9 = vcmask 1046534  }
   0x4   :  { %3847 = vmatprep.subr.bf16.mxu0 %v4143_v1  ;;  %3851 = vmatprep.mubr.msk.bf16.mxu0 %vm954_vm0, %v4145_v3  ;;  %v4162_v10 = vld [vmem:[%s5651_s0 + $0x218] sm:$0xff]   ;;  %v4165_v11 = vld [vmem:[%s5651_s0 + $0x220] sm:$0xff]   ;;  %v4150_v12 = vld [vmem:[%s5651_s0 + $0x28] sm:$0xff]   ;;  %vm3245_vm10 = vcmask 1047559   ;;  %vm3320_vm11 = vcmask 261120  }
   0x5   :  { %4130 = vmatprep.subr.bf16.mxu1 %v4143_v1  ;;  %3983 = vmatprep.mubr.msk.bf16.mxu1 %vm954_vm0, %v4161_v9  ;;  %v4151_v13 = vld [vmem:[%s5651_s0 + $0x30] sm:$0xff]   ;;  %v4166_v14 = vld [vmem:[%s5651_s0 + $0x228] sm:$0xff]   ;;  %v4152_v16 = vld [vmem:[%s5651_s0 + $0x38] sm:$0xff]  }
   0x6   :  { %v4169_v15 = vld [vmem:[%s5651_s0 + $0x230] sm:$0xff]   ;;  %v4153_v17 = vld [vmem:[%s5651_s0 + $0x40] sm:$0xff]   ;;  %v4170_v18 = vld [vmem:[%s5651_s0 + $0x238] sm:$0xff]  }
   0x7   :  { %3848 = vmatpush3.bf16.msra.mxu0 %v4143_v1  ;;  %4133 = vmatpush3.bf16.msra.mxu1 %v4143_v1  ;;  %v4173_v19 = vld [vmem:[%s5651_s0 + $0x240] sm:$0xff]   ;;  %v4154_v20 = vld [vmem:[%s5651_s0 + $0x48] sm:$0xff]   ;;  %v4155_v21 = vld [vmem:[%s5651_s0 + $0x50] sm:$0xff]  }
   0x8   :  { %4135 = vmatprep.subr.msk.bf16.mxu0 %vm1339_vm1, %v4144_v2  ;;  %4136 = vmatprep.subr.msk.bf16.mxu1 %vm1339_vm1, %v4144_v2  ;;  %v4174_v22 = vld [vmem:[%s5651_s0 + $0x248] sm:$0xff]   ;;  %v4177_v23 = vld [vmem:[%s5651_s0 + $0x250] sm:$0xff]   ;;  %v4156_v24 = vld [vmem:[%s5651_s0 + $0x58] sm:$0xff]  }
   0x9   :  { %v4157_v25 = vld [vmem:[%s5651_s0 + $0x60] sm:$0xff]   ;;  %v4178_v26 = vld [vmem:[%s5651_s0 + $0x258] sm:$0xff]   ;;  %v4158_v28 = vld [vmem:[%s5651_s0 + $0x68] sm:$0xff]  }
   0xa   :  { %v4181_v27 = vld [vmem:[%s5651_s0 + $0x260] sm:$0xff]   ;;  %v4159_v29 = vld [vmem:[%s5651_s0 + $0x70] sm:$0xff]   ;;  %v4182_v30 = vld [vmem:[%s5651_s0 + $0x268] sm:$0xff]  }
   0xb   :  { %3850 = vmatpush3.bf16.msra.mxu0 %v1341_v4  ;;  %4134 = vmatpush3.bf16.msra.mxu1 %v1341_v4  ;;  %v4185_v31 = vld [vmem:[%s5651_s0 + $0x270] sm:$0xff]   ;;  %v4160_v32 = vld [vmem:[%s5651_s0 + $0x78] sm:$0xff]   ;;  %v4163_v33 = vld [vmem:[%s5651_s0 + $0x80] sm:$0xff]  }
   0xc   :  { %v4186_v34 = vld [vmem:[%s5651_s0 + $0x278] sm:$0xff]   ;;  %v4189_v35 = vld [vmem:[%s5651_s0 + $0x280] sm:$0xff]   ;;  %v4164_v36 = vld [vmem:[%s5651_s0 + $0x88] sm:$0xff]  }
   0xd   :  { %v4167_v37 = vld [vmem:[%s5651_s0 + $0x90] sm:$0xff]   ;;  %v4190_v38 = vld [vmem:[%s5651_s0 + $0x288] sm:$0xff]   ;;  %v4168_v40 = vld [vmem:[%s5651_s0 + $0x98] sm:$0xff]  }
   0xe   :  { %3852 = vmatmul.mubr.msk.bf16.vlgmr.msra.gmra.mrb[0].mxu0 %vm954_vm0, %v4146_v5  ;;  %3984 = vmatmul.mubr.msk.bf16.vlgmr.msra.gmra.mrb[0].mxu1 %vm954_vm0, %v4162_v10  ;;  %v4193_v39 = vld [vmem:[%s5651_s0 + $0x290] sm:$0xff]   ;;  %v4171_v41 = vld [vmem:[%s5651_s0 + $0xa0] sm:$0xff]   ;;  %v4194_v42 = vld [vmem:[%s5651_s0 + $0x298] sm:$0xff]  }
   0xf   :  { %3855 = vmatprep.mubr.msk.bf16.mxu0 %vm954_vm0, %v4147_v6  ;;  %3987 = vmatprep.mubr.msk.bf16.mxu1 %vm954_vm0, %v4165_v11  ;;  %v4197_v43 = vld [vmem:[%s5651_s0 + $0x2a0] sm:$0xff]   ;;  %v4172_v44 = vld [vmem:[%s5651_s0 + $0xa8] sm:$0xff]   ;;  %v4175_v45 = vld [vmem:[%s5651_s0 + $0xb0] sm:$0xff]  }
  0x10   :  { %v4198_v46 = vld [vmem:[%s5651_s0 + $0x2a8] sm:$0xff]   ;;  %v4201_v47 = vld [vmem:[%s5651_s0 + $0x2b0] sm:$0xff]   ;;  %v4176_v48 = vld [vmem:[%s5651_s0 + $0xb8] sm:$0xff]  }
  0x11   :  { %v4179_v49 = vld [vmem:[%s5651_s0 + $0xc0] sm:$0xff]   ;;  %v4202_v50 = vld [vmem:[%s5651_s0 + $0x2b8] sm:$0xff]   ;;  %v4180_v52 = vld [vmem:[%s5651_s0 + $0xc8] sm:$0xff]  }
  0x12   :  { %v4205_v51 = vld [vmem:[%s5651_s0 + $0x2c0] sm:$0xff]   ;;  %v4183_v53 = vld [vmem:[%s5651_s0 + $0xd0] sm:$0xff]   ;;  %v4206_v54 = vld [vmem:[%s5651_s0 + $0x2c8] sm:$0xff]  }
  0x13   :  { %v4209_v55 = vld [vmem:[%s5651_s0 + $0x2d0] sm:$0xff]   ;;  %v4184_v56 = vld [vmem:[%s5651_s0 + $0xd8] sm:$0xff]   ;;  %v4187_v57 = vld [vmem:[%s5651_s0 + $0xe0] sm:$0xff]  }
  0x14   :  { %v4210_v58 = vld [vmem:[%s5651_s0 + $0x2d8] sm:$0xff]   ;;  %v4213_v59 = vld [vmem:[%s5651_s0 + $0x2e0] sm:$0xff]   ;;  %v4188_v60 = vld [vmem:[%s5651_s0 + $0xe8] sm:$0xff]  }
  0x15   :  { %v4191_v61 = vld [vmem:[%s5651_s0 + $0xf0] sm:$0xff]   ;;  %v4214_v62 = vld [vmem:[%s5651_s0 + $0x2e8] sm:$0xff]   ;;  %v4192_v0 = vld [vmem:[%s5651_s0 + $0xf8] sm:$0xff]  }
  0x16   :  { %3856 = vmatmul.mubr.msk.bf16.gmra.mrb[4].mxu0 %vm954_vm0, %v4148_v7  ;;  %3988 = vmatmul.mubr.msk.bf16.gmra.mrb[4].mxu1 %vm954_vm0, %v4166_v14  ;;  %v4217_v63 = vld [vmem:[%s5651_s0 + $0x2f0] sm:$0xff]   ;;  %v4218_v1 = vld [vmem:[%s5651_s0 + $0x2f8] sm:$0xff]   ;;  %v4195_v2 = vld [vmem:[%s5651_s0 + $0x100] sm:$0xff]  }
  0x17   :  { %3859 = vmatprep.mubr.msk.bf16.mxu0 %vm954_vm0, %v4149_v8  ;;  %3991 = vmatprep.mubr.msk.bf16.mxu1 %vm954_vm0, %v4169_v15  ;;  %v4221_v3 = vld [vmem:[%s5651_s0 + $0x300] sm:$0xff]   ;;  %v4196_v4 = vld [vmem:[%s5651_s0 + $0x108] sm:$0xff]   ;;  %v4199_v6 = vld [vmem:[%s5651_s0 + $0x110] sm:$0xff]  }
  0x18   :  { %v4222_v5 = vld [vmem:[%s5651_s0 + $0x308] sm:$0xff]   ;;  %v4225_v7 = vld [vmem:[%s5651_s0 + $0x310] sm:$0xff]   ;;  %v4200_v8 = vld [vmem:[%s5651_s0 + $0x118] sm:$0xff]  }
  0x19   :  { %v4226_v9 = vld [vmem:[%s5651_s0 + $0x318] sm:$0xff]   ;;  %v4203_v10 = vld [vmem:[%s5651_s0 + $0x120] sm:$0xff]   ;;  %v4207_v14 = vld [vmem:[%s5651_s0 + $0x130] sm:$0xff]  }
  0x1a   :  { %v4229_v11 = vld [vmem:[%s5651_s0 + $0x320] sm:$0xff]   ;;  %v4233_v15 = vld [vmem:[%s5651_s0 + $0x330] sm:$0xff]  }
  0x1e   :  { %3860 = vmatmul.mubr.msk.bf16.gmra.mrb[8].mxu0 %vm954_vm0, %v4150_v12  ;;  %3992 = vmatmul.mubr.msk.bf16.gmra.mrb[8].mxu1 %vm954_vm0, %v4170_v18  ;;  %v4204_v12 = vld [vmem:[%s5651_s0 + $0x128] sm:$0xff]   ;;  %v4211_v18 = vld [vmem:[%s5651_s0 + $0x140] sm:$0xff]  }
  0x1f   :  { %3863 = vmatprep.mubr.msk.bf16.mxu0 %vm954_vm0, %v4151_v13  ;;  %3995 = vmatprep.mubr.msk.bf16.mxu1 %vm954_vm0, %v4173_v19  ;;  %v4230_v13 = vld [vmem:[%s5651_s0 + $0x328] sm:$0xff]   ;;  %v4237_v19 = vld [vmem:[%s5651_s0 + $0x340] sm:$0xff]  }
  0x26   :  { %3864 = vmatmul.mubr.msk.bf16.gmra.mrb[12].mxu0 %vm954_vm0, %v4152_v16  ;;  %3996 = vmatmul.mubr.msk.bf16.gmra.mrb[12].mxu1 %vm954_vm0, %v4174_v22  ;;  %v4208_v16 = vld [vmem:[%s5651_s0 + $0x138] sm:$0xff]   ;;  %v4215_v22 = vld [vmem:[%s5651_s0 + $0x150] sm:$0xff]  }
  0x27   :  { %3867 = vmatprep.mubr.msk.bf16.mxu0 %vm954_vm0, %v4153_v17  ;;  %3999 = vmatprep.mubr.msk.bf16.mxu1 %vm954_vm0, %v4177_v23  ;;  %v4234_v17 = vld [vmem:[%s5651_s0 + $0x338] sm:$0xff]   ;;  %v4241_v23 = vld [vmem:[%s5651_s0 + $0x350] sm:$0xff]  }
  0x2e   :  { %3868 = vmatmul.mubr.msk.bf16.gmra.mrb[16].mxu0 %vm954_vm0, %v4154_v20  ;;  %4000 = vmatmul.mubr.msk.bf16.gmra.mrb[16].mxu1 %vm954_vm0, %v4178_v26  ;;  %v4212_v20 = vld [vmem:[%s5651_s0 + $0x148] sm:$0xff]   ;;  %v4219_v26 = vld [vmem:[%s5651_s0 + $0x160] sm:$0xff]  }
  0x2f   :  { %3871 = vmatprep.mubr.msk.bf16.mxu0 %vm954_vm0, %v4155_v21  ;;  %4003 = vmatprep.mubr.msk.bf16.mxu1 %vm954_vm0, %v4181_v27  ;;  %v4238_v21 = vld [vmem:[%s5651_s0 + $0x348] sm:$0xff]   ;;  %v4245_v27 = vld [vmem:[%s5651_s0 + $0x360] sm:$0xff]  }
  0x36   :  { %3872 = vmatmul.mubr.msk.bf16.gmra.mrb[20].mxu0 %vm954_vm0, %v4156_v24  ;;  %4004 = vmatmul.mubr.msk.bf16.gmra.mrb[20].mxu1 %vm954_vm0, %v4182_v30  ;;  %v4216_v24 = vld [vmem:[%s5651_s0 + $0x158] sm:$0xff]   ;;  %v4223_v30 = vld [vmem:[%s5651_s0 + $0x170] sm:$0xff]  }
  0x37   :  { %3875 = vmatprep.mubr.msk.bf16.mxu0 %vm954_vm0, %v4157_v25  ;;  %4007 = vmatprep.mubr.msk.bf16.mxu1 %vm954_vm0, %v4185_v31  ;;  %v4242_v25 = vld [vmem:[%s5651_s0 + $0x358] sm:$0xff]   ;;  %v4249_v31 = vld [vmem:[%s5651_s0 + $0x370] sm:$0xff]  }
  0x3e   :  { %3876 = vmatmul.mubr.msk.bf16.gmra.mrb[24].mxu0 %vm954_vm0, %v4158_v28  ;;  %4008 = vmatmul.mubr.msk.bf16.gmra.mrb[24].mxu1 %vm954_vm0, %v4186_v34  ;;  %v4220_v28 = vld [vmem:[%s5651_s0 + $0x168] sm:$0xff]   ;;  %v4227_v34 = vld [vmem:[%s5651_s0 + $0x180] sm:$0xff]  }
  0x3f   :  { %3879 = vmatprep.mubr.msk.bf16.mxu0 %vm954_vm0, %v4159_v29  ;;  %4011 = vmatprep.mubr.msk.bf16.mxu1 %vm954_vm0, %v4189_v35  ;;  %v4246_v29 = vld [vmem:[%s5651_s0 + $0x368] sm:$0xff]   ;;  %v4253_v35 = vld [vmem:[%s5651_s0 + $0x380] sm:$0xff]  }
  0x46   :  { %3880 = vmatmul.mubr.msk.bf16.gmra.mrb[28].mxu0 %vm954_vm0, %v4160_v32  ;;  %4012 = vmatmul.mubr.msk.bf16.gmra.mrb[28].mxu1 %vm954_vm0, %v4190_v38  ;;  %v4224_v32 = vld [vmem:[%s5651_s0 + $0x178] sm:$0xff]   ;;  %v4228_v38 = vld [vmem:[%s5651_s0 + $0x188] sm:$0xff]  }
  0x47   :  { %3883 = vmatprep.mubr.msk.bf16.mxu0 %vm954_vm0, %v4163_v33  ;;  %4015 = vmatprep.mubr.msk.bf16.mxu1 %vm954_vm0, %v4193_v39  ;;  %v4250_v33 = vld [vmem:[%s5651_s0 + $0x378] sm:$0xff]   ;;  %v4254_v39 = vld [vmem:[%s5651_s0 + $0x388] sm:$0xff]  }
  0x4e   :  { %3884 = vmatmul.mubr.msk.bf16.gmra.mrb[32].mxu0 %vm954_vm0, %v4164_v36  ;;  %4016 = vmatmul.mubr.msk.bf16.gmra.mrb[32].mxu1 %vm954_vm0, %v4194_v42  ;;  %v5658_v36 = vmov 0.0   ;;  %v4232_v42 = vld [vmem:[%s5651_s0 + $0x198] sm:$0xff]  }
  0x4f   :  { %3887 = vmatprep.mubr.msk.bf16.mxu0 %vm954_vm0, %v4167_v37  ;;  %4019 = vmatprep.mubr.msk.bf16.mxu1 %vm954_vm0, %v4197_v43  ;;  %v3217_v37 = vld [vmem:[%s5652_s3] sm:$0xff]  ;;  %v4258_v43 = vld [vmem:[%s5651_s0 + $0x398] sm:$0xff]  }
  0x50   :  { %4107 = vmatprep.subr.mxu1 %v5658_v36 }
  0x51   :  { %4108 = vmatpush3.msra.mxu1 %v3217_v37 }
  0x56   :  { %3888 = vmatmul.mubr.msk.bf16.gmra.mrb[36].mxu0 %vm954_vm0, %v4168_v40  ;;  %4020 = vmatmul.mubr.msk.bf16.gmra.mrb[36].mxu1 %vm954_vm0, %v4198_v46  ;;  %v4231_v40 = vld [vmem:[%s5651_s0 + $0x190] sm:$0xff]   ;;  %v4236_v46 = vld [vmem:[%s5651_s0 + $0x1a8] sm:$0xff]  }
  0x57   :  { %3891 = vmatprep.mubr.msk.bf16.mxu0 %vm954_vm0, %v4171_v41  ;;  %4023 = vmatprep.mubr.msk.bf16.mxu1 %vm954_vm0, %v4201_v47  ;;  %v4257_v41 = vld [vmem:[%s5651_s0 + $0x390] sm:$0xff]   ;;  %v4262_v47 = vld [vmem:[%s5651_s0 + $0x3a8] sm:$0xff]  }
  0x5e   :  { %3892 = vmatmul.mubr.msk.bf16.gmra.mrb[40].mxu0 %vm954_vm0, %v4172_v44  ;;  %4024 = vmatmul.mubr.msk.bf16.gmra.mrb[40].mxu1 %vm954_vm0, %v4202_v50  ;;  %v4235_v44 = vld [vmem:[%s5651_s0 + $0x1a0] sm:$0xff]  }
  0x5f   :  { %3895 = vmatprep.mubr.msk.bf16.mxu0 %vm954_vm0, %v4175_v45  ;;  %4027 = vmatprep.mubr.msk.bf16.mxu1 %vm954_vm0, %v4205_v51  ;;  %v4261_v45 = vld [vmem:[%s5651_s0 + $0x3a0] sm:$0xff]  }
  0x60   :  { %v4771_v50 = vld [vmem:[%s5653_s2] ss:$0 sm:$0xff] }
  0x66   :  { %3896 = vmatmul.mubr.msk.bf16.gmra.mrb[44].mxu0 %vm954_vm0, %v4176_v48  ;;  %4028 = vmatmul.mubr.msk.bf16.gmra.mrb[44].mxu1 %vm954_vm0, %v4206_v54  ;;  %v4239_v48 = vld [vmem:[%s5651_s0 + $0x1b0] sm:$0xff]   ;;  %v4264_v54 = vld [vmem:[%s5651_s0 + $0x3b8] sm:$0xff]  }
  0x67   :  { %3899 = vmatprep.mubr.msk.bf16.mxu0 %vm954_vm0, %v4179_v49  ;;  %4031 = vmatprep.mubr.msk.bf16.mxu1 %vm954_vm0, %v4209_v55  ;;  %v4263_v49 = vld [vmem:[%s5651_s0 + $0x3b0] sm:$0xff]  }
  0x6e   :  { %3900 = vmatmul.mubr.msk.bf16.gmra.mrb[48].mxu0 %vm954_vm0, %v4180_v52  ;;  %4032 = vmatmul.mubr.msk.bf16.gmra.mrb[48].mxu1 %vm954_vm0, %v4210_v58  ;;  %v4243_v58 = vld [vmem:[%s5651_s0 + $0x1c0] sm:$0xff]  }
  0x6f   :  { %3903 = vmatprep.mubr.msk.bf16.mxu0 %vm954_vm0, %v4183_v53  ;;  %4035 = vmatprep.mubr.msk.bf16.mxu1 %vm954_vm0, %v4213_v59  ;;  %v4240_v53 = vld [vmem:[%s5651_s0 + $0x1b8] sm:$0xff]   ;;  %v4265_v59 = vld [vmem:[%s5651_s0 + $0x3c0] sm:$0xff]  }
  0x76   :  { %3904 = vmatmul.mubr.msk.bf16.gmra.mrb[52].mxu0 %vm954_vm0, %v4184_v56  ;;  %4036 = vmatmul.mubr.msk.bf16.gmra.mrb[52].mxu1 %vm954_vm0, %v4214_v62 }
  0x77   :  { %3907 = vmatprep.mubr.msk.bf16.mxu0 %vm954_vm0, %v4187_v57  ;;  %4039 = vmatprep.mubr.msk.bf16.mxu1 %vm954_vm0, %v4217_v63 }
  0x7e   :  { %3908 = vmatmul.mubr.msk.bf16.gmra.mrb[56].mxu0 %vm954_vm0, %v4188_v60  ;;  %4040 = vmatmul.mubr.msk.bf16.gmra.mrb[56].mxu1 %vm954_vm0, %v4218_v1 }
  0x7f   :  { %3911 = vmatprep.mubr.msk.bf16.mxu0 %vm954_vm0, %v4191_v61  ;;  %4043 = vmatprep.mubr.msk.bf16.mxu1 %vm954_vm0, %v4221_v3 }
  0x86   :  { %3912 = vmatmul.mubr.msk.bf16.gmra.mrb[60].mxu0 %vm954_vm0, %v4192_v0  ;;  %4044 = vmatmul.mubr.msk.bf16.gmra.mrb[60].mxu1 %vm954_vm0, %v4222_v5 }
  0x87   :  { %3915 = vmatprep.mubr.msk.bf16.mxu0 %vm954_vm0, %v4195_v2  ;;  %4047 = vmatprep.mubr.msk.bf16.mxu1 %vm954_vm0, %v4225_v7 }
  0x8e   :  { %3916 = vmatmul.mubr.msk.bf16.gmra.mrb[64].mxu0 %vm954_vm0, %v4196_v4  ;;  %4048 = vmatmul.mubr.msk.bf16.gmra.mrb[64].mxu1 %vm954_vm0, %v4226_v9  ;;  %v4244_v9 = vld [vmem:[%s5651_s0 + $0x1c8] sm:$0xff]  }
  0x8f   :  { %3919 = vmatprep.mubr.msk.bf16.mxu0 %vm954_vm0, %v4199_v6  ;;  %4051 = vmatprep.mubr.msk.bf16.mxu1 %vm954_vm0, %v4229_v11 }
  0x96   :  { %3920 = vmatmul.mubr.msk.bf16.gmra.mrb[68].mxu0 %vm954_vm0, %v4200_v8  ;;  %4052 = vmatmul.mubr.msk.bf16.gmra.mrb[68].mxu1 %vm954_vm0, %v4230_v13 }
  0x97   :  { %3923 = vmatprep.mubr.msk.bf16.mxu0 %vm954_vm0, %v4203_v10  ;;  %4055 = vmatprep.mubr.msk.bf16.mxu1 %vm954_vm0, %v4233_v15  ;;  %v4266_v10 = vld [vmem:[%s5651_s0 + $0x3c8] sm:$0xff]  }
  0x9e   :  { %3924 = vmatmul.mubr.msk.bf16.gmra.mrb[72].mxu0 %vm954_vm0, %v4204_v12  ;;  %4056 = vmatmul.mubr.msk.bf16.gmra.mrb[72].mxu1 %vm954_vm0, %v4234_v17 }
  0x9f   :  { %3927 = vmatprep.mubr.msk.bf16.mxu0 %vm954_vm0, %v4207_v14  ;;  %4059 = vmatprep.mubr.msk.bf16.mxu1 %vm954_vm0, %v4237_v19 }
  0xa6   :  { %3928 = vmatmul.mubr.msk.bf16.gmra.mrb[76].mxu0 %vm954_vm0, %v4208_v16  ;;  %4060 = vmatmul.mubr.msk.bf16.gmra.mrb[76].mxu1 %vm954_vm0, %v4238_v21  ;;  %v4247_v16 = vld [vmem:[%s5651_s0 + $0x1d0] sm:$0xff]  }
  0xa7   :  { %3931 = vmatprep.mubr.msk.bf16.mxu0 %vm954_vm0, %v4211_v18  ;;  %4063 = vmatprep.mubr.msk.bf16.mxu1 %vm954_vm0, %v4241_v23  ;;  %v4267_v18 = vld [vmem:[%s5651_s0 + $0x3d0] sm:$0xff]  }
  0xae   :  { %3932 = vmatmul.mubr.msk.bf16.gmra.mrb[80].mxu0 %vm954_vm0, %v4212_v20  ;;  %4064 = vmatmul.mubr.msk.bf16.gmra.mrb[80].mxu1 %vm954_vm0, %v4242_v25 }
  0xaf   :  { %3935 = vmatprep.mubr.msk.bf16.mxu0 %vm954_vm0, %v4215_v22  ;;  %4067 = vmatprep.mubr.msk.bf16.mxu1 %vm954_vm0, %v4245_v27 }
  0xb6   :  { %3936 = vmatmul.mubr.msk.bf16.gmra.mrb[84].mxu0 %vm954_vm0, %v4216_v24  ;;  %4068 = vmatmul.mubr.msk.bf16.gmra.mrb[84].mxu1 %vm954_vm0, %v4246_v29 }
  0xb7   :  { %3939 = vmatprep.mubr.msk.bf16.mxu0 %vm954_vm0, %v4219_v26  ;;  %4071 = vmatprep.mubr.msk.bf16.mxu1 %vm954_vm0, %v4249_v31 }
  0xbe   :  { %3940 = vmatmul.mubr.msk.bf16.gmra.mrb[88].mxu0 %vm954_vm0, %v4220_v28  ;;  %4072 = vmatmul.mubr.msk.bf16.gmra.mrb[88].mxu1 %vm954_vm0, %v4250_v33 }
  0xbf   :  { %3943 = vmatprep.mubr.msk.bf16.mxu0 %vm954_vm0, %v4223_v30  ;;  %4075 = vmatprep.mubr.msk.bf16.mxu1 %vm954_vm0, %v4253_v35 }
  0xc6   :  { %3944 = vmatmul.mubr.msk.bf16.gmra.mrb[92].mxu0 %vm954_vm0, %v4224_v32  ;;  %4076 = vmatmul.mubr.msk.bf16.gmra.mrb[92].mxu1 %vm954_vm0, %v4254_v39  ;;  %v4268_v39 = vld [vmem:[%s5651_s0 + $0x3d8] sm:$0xff]  }
  0xc7   :  { %3947 = vmatprep.mubr.msk.bf16.mxu0 %vm954_vm0, %v4227_v34  ;;  %4079 = vmatprep.mubr.msk.bf16.mxu1 %vm954_vm0, %v4257_v41 }
  0xce   :  { %3948 = vmatmul.mubr.msk.bf16.gmra.mrb[96].mxu0 %vm954_vm0, %v4228_v38  ;;  %4080 = vmatmul.mubr.msk.bf16.gmra.mrb[96].mxu1 %vm954_vm0, %v4258_v43  ;;  %v4248_v38 = vld [vmem:[%s5651_s0 + $0x1d8] sm:$0xff]  }
  0xcf   :  { %3951 = vmatprep.mubr.msk.bf16.mxu0 %vm954_vm0, %v4231_v40  ;;  %4083 = vmatprep.mubr.msk.bf16.mxu1 %vm954_vm0, %v4261_v45  ;;  %v4251_v45 = vld [vmem:[%s5651_s0 + $0x1e0] sm:$0xff]  }
  0xd6   :  { %3952 = vmatmul.mubr.msk.bf16.gmra.mrb[100].mxu0 %vm954_vm0, %v4232_v42  ;;  %4084 = vmatmul.mubr.msk.bf16.gmra.mrb[100].mxu1 %vm954_vm0, %v4262_v47  ;;  %v4269_v47 = vld [vmem:[%s5651_s0 + $0x3e0] sm:$0xff]  }
  0xd7   :  { %3955 = vmatprep.mubr.msk.bf16.mxu0 %vm954_vm0, %v4235_v44  ;;  %4087 = vmatprep.mubr.msk.bf16.mxu1 %vm954_vm0, %v4263_v49 }
  0xde   :  { %3956 = vmatmul.mubr.msk.bf16.gmra.mrb[104].mxu0 %vm954_vm0, %v4236_v46  ;;  %4088 = vmatmul.mubr.msk.bf16.gmra.mrb[104].mxu1 %vm954_vm0, %v4264_v54 }
  0xdf   :  { %3959 = vmatprep.mubr.msk.bf16.mxu0 %vm954_vm0, %v4239_v48  ;;  %4091 = vmatprep.mubr.msk.bf16.mxu1 %vm954_vm0, %v4265_v59 }
  0xe1   :  { %v3853_v51 = vpop.f32.mrb[0].mxu0  ;;  %v4795_v6 = vpop.f32.mrb[0].mxu1 }
  0xe2   :  { %v1377_v52 = vpop.f32.mrb[1].mxu0  ;;  %v1386_v55 = vadd.f32 %v3853_v51, %v4771_v50  ;;  %v4803_v11 = vpop.f32.mrb[1].mxu1 }
  0xe3   :  { %v1378_v56 = vadd.f32 %v4771_v50, %v1377_v52  ;;  %v3854_v57 = vpop.f32.mrb[2].mxu0  ;;  %v4811_v17 = vpop.f32.mrb[2].mxu1 }
  0xe4   :  { %v1380_v60 = vpop.f32.mrb[3].mxu0  ;;  %v1389_v62 = vadd.f32 %v3854_v57, %v4771_v50  ;;  %v2402_v0 = vmax.f32 %v1386_v55, 0.0  ;;  %v4816_v21 = vpop.f32.mrb[3].mxu1 }
  0xe5   :  { %v2400_v61 = vmax.f32 %v1378_v56, 0.0  ;;  %v1381_v63 = vadd.f32 %v4771_v50, %v1380_v60 }
  0xe6   :  { %3960 = vmatmul.mubr.msk.bf16.gmra.mrb[108].mxu0 %vm954_vm0, %v4240_v53  ;;  %v2403_v3 = vmax.f32 %v1389_v62, 0.0  ;;  %v2660_v12 = vsel %vm2656_vm2, %v2402_v0, 0.0  ;;  %4092 = vmatmul.mubr.msk.bf16.gmra.mrb[108].mxu1 %vm954_vm0, %v4266_v10 }
  0xe7   :  { %v2401_v1 = vmax.f32 %v1381_v63, 0.0  ;;  %3963 = vmatprep.mubr.msk.bf16.mxu0 %vm954_vm0, %v4243_v58  ;;  %v2657_v2 = vsel %vm2656_vm2, %v2400_v61, 0.0  ;;  %4095 = vmatprep.mubr.msk.bf16.mxu1 %vm954_vm0, %v4267_v18 }
  0xe8   :  { %v2662_v22 = vsel %vm2656_vm2, %v2403_v3, 0.0  ;;  %v4252_v3 = vld [vmem:[%s5651_s0 + $0x1e8] sm:$0xff]  }
  0xe9   :  { %v2658_v4 = vsel %vm2656_vm2, %v2401_v1, 0.0  ;;  %v3857_v5 = vpop.f32.mrb[4].mxu0  ;;  %v4827_v34 = vpop.f32.mrb[4].mxu1 }
  0xea   :  { %v2659_v7 = vadd.f32 %v2658_v4, %v2657_v2  ;;  %v1393_v8 = vpop.f32.mrb[5].mxu0  ;;  %v1402_v13 = vadd.f32 %v3857_v5, %v4771_v50  ;;  %v4835_v40 = vpop.f32.mrb[5].mxu1  ;;  %v4270_v4 = vld [vmem:[%s5651_s0 + $0x3e8] sm:$0xff]  }
  0xeb   :  { %v1394_v14 = vadd.f32 %v4771_v50, %v1393_v8  ;;  %v3858_v15 = vpop.f32.mrb[6].mxu0  ;;  %v4843_v46 = vpop.f32.mrb[6].mxu1 }
  0xec   :  { %v2661_v19 = vadd.f32 %v2660_v12, %v2659_v7  ;;  %v1396_v20 = vpop.f32.mrb[7].mxu0  ;;  %v1405_v24 = vadd.f32 %v3858_v15, %v4771_v50  ;;  %v2406_v27 = vmax.f32 %v1402_v13, 0.0  ;;  %v4848_v51 = vpop.f32.mrb[7].mxu1  ;;  %v4255_v12 = vld [vmem:[%s5651_s0 + $0x1f0] sm:$0xff]  }
  0xed   :  { %v2404_v23 = vmax.f32 %v1394_v14, 0.0  ;;  %v1397_v25 = vadd.f32 %v4771_v50, %v1396_v20  ;;  %v4271_v14 = vld [vmem:[%s5651_s0 + $0x3f0] sm:$0xff]  }
  0xee   :  { %v2663_v26 = vadd.f32 %v2662_v22, %v2661_v19  ;;  %3964 = vmatmul.mubr.msk.bf16.gmra.mrb[112].mxu0 %vm954_vm0, %v4244_v9  ;;  %v2407_v31 = vmax.f32 %v1405_v24, 0.0  ;;  %v2668_v41 = vsel %vm2656_vm2, %v2406_v27, 0.0  ;;  %4096 = vmatmul.mubr.msk.bf16.gmra.mrb[112].mxu1 %vm954_vm0, %v4268_v39 }
  0xef   :  { %v2664_v28 = vsel %vm2656_vm2, %v2404_v23, 0.0  ;;  %v2405_v29 = vmax.f32 %v1397_v25, 0.0  ;;  %3967 = vmatprep.mubr.msk.bf16.mxu0 %vm954_vm0, %v4247_v16  ;;  %4099 = vmatprep.mubr.msk.bf16.mxu1 %vm954_vm0, %v4269_v47 }
  0xf0   :  { %v2665_v30 = vadd.f32 %v2664_v28, %v2663_v26  ;;  %v2670_v52 = vsel %vm2656_vm2, %v2407_v31, 0.0 }
  0xf1   :  { %v2666_v32 = vsel %vm2656_vm2, %v2405_v29, 0.0  ;;  %v3861_v33 = vpop.f32.mrb[8].mxu0  ;;  %v4859_v0 = vpop.f32.mrb[8].mxu1 }
  0xf2   :  { %v2667_v35 = vadd.f32 %v2666_v32, %v2665_v30  ;;  %v1409_v37 = vpop.f32.mrb[9].mxu0  ;;  %v1418_v42 = vadd.f32 %v3861_v33, %v4771_v50  ;;  %v4867_v5 = vpop.f32.mrb[9].mxu1 }
  0xf3   :  { %v1410_v43 = vadd.f32 %v4771_v50, %v1409_v37  ;;  %v3862_v44 = vpop.f32.mrb[10].mxu0  ;;  %v4875_v13 = vpop.f32.mrb[10].mxu1  ;;  %v4256_v37 = vld [vmem:[%s5651_s0 + $0x1f8] sm:$0xff]  }
  0xf4   :  { %v2669_v48 = vadd.f32 %v2668_v41, %v2667_v35  ;;  %v1412_v49 = vpop.f32.mrb[11].mxu0  ;;  %v1421_v54 = vadd.f32 %v3862_v44, %v4771_v50  ;;  %v2410_v57 = vmax.f32 %v1418_v42, 0.0  ;;  %v4880_v18 = vpop.f32.mrb[11].mxu1 }
  0xf5   :  { %v2408_v53 = vmax.f32 %v1410_v43, 0.0  ;;  %v1413_v55 = vadd.f32 %v4771_v50, %v1412_v49 }
  0xf6   :  { %v2671_v56 = vadd.f32 %v2670_v52, %v2669_v48  ;;  %3968 = vmatmul.mubr.msk.bf16.gmra.mrb[116].mxu0 %vm954_vm0, %v4248_v38  ;;  %v2411_v61 = vmax.f32 %v1421_v54, 0.0  ;;  %v2676_v7 = vsel %vm2656_vm2, %v2410_v57, 0.0  ;;  %4100 = vmatmul.mubr.msk.bf16.gmra.mrb[116].mxu1 %vm954_vm0, %v4270_v4  ;;  %v4272_v38 = vld [vmem:[%s5651_s0 + $0x3f8] sm:$0xff]  }
  0xf7   :  { %v2672_v58 = vsel %vm2656_vm2, %v2408_v53, 0.0  ;;  %v2409_v59 = vmax.f32 %v1413_v55, 0.0  ;;  %3971 = vmatprep.mubr.msk.bf16.mxu0 %vm954_vm0, %v4251_v45  ;;  %4103 = vmatprep.mubr.msk.bf16.mxu1 %vm954_vm0, %v4271_v14  ;;  %v4259_v45 = vld [vmem:[%s5651_s0 + $0x200] sm:$0xff]  }
  0xf8   :  { %v2673_v60 = vadd.f32 %v2672_v58, %v2671_v56  ;;  %v2678_v19 = vsel %vm2656_vm2, %v2411_v61, 0.0 }
  0xf9   :  { %v2674_v62 = vsel %vm2656_vm2, %v2409_v59, 0.0  ;;  %v3865_v63 = vpop.f32.mrb[12].mxu0  ;;  %v4891_v32 = vpop.f32.mrb[12].mxu1 }
  0xfa   :  { %v2675_v1 = vadd.f32 %v2674_v62, %v2673_v60  ;;  %v1425_v2 = vpop.f32.mrb[13].mxu0  ;;  %v1434_v8 = vadd.f32 %v3865_v63, %v4771_v50  ;;  %v4899_v39 = vpop.f32.mrb[13].mxu1 }
  0xfb   :  { %v1426_v9 = vadd.f32 %v4771_v50, %v1425_v2  ;;  %v3866_v10 = vpop.f32.mrb[14].mxu0  ;;  %v4907_v47 = vpop.f32.mrb[14].mxu1 }
  0xfc   :  { %v2677_v15 = vadd.f32 %v2676_v7, %v2675_v1  ;;  %v1428_v16 = vpop.f32.mrb[15].mxu0  ;;  %v1437_v22 = vadd.f32 %v3866_v10, %v4771_v50  ;;  %v2414_v25 = vmax.f32 %v1434_v8, 0.0  ;;  %v4909_v52 = vpop.f32.mrb[15].mxu1  ;;  %v4260_v7 = vld [vmem:[%s5651_s0 + $0x208] sm:$0xff]  }
  0xfd   :  { %v2412_v20 = vmax.f32 %v1426_v9, 0.0  ;;  %v1429_v23 = vadd.f32 %v4771_v50, %v1428_v16 }
  0xfe   :  { %v2679_v24 = vadd.f32 %v2678_v19, %v2677_v15  ;;  %3972 = vmatmul.mubr.msk.bf16.gmra.mrb[120].mxu0 %vm954_vm0, %v4252_v3  ;;  %v2415_v29 = vmax.f32 %v1437_v22, 0.0  ;;  %v2684_v41 = vsel %vm2656_vm2, %v2414_v25, 0.0  ;;  %4104 = vmatmul.mubr.msk.bf16.gmra.mrb[120].mxu1 %vm954_vm0, %v4272_v38 }
  0xff   :  { %v2680_v26 = vsel %vm2656_vm2, %v2412_v20, 0.0  ;;  %v2413_v27 = vmax.f32 %v1429_v23, 0.0  ;;  %3975 = vmatprep.mubr.msk.bf16.mxu0 %vm954_vm0, %v4255_v12 }
 0x100   :  { %v2681_v28 = vadd.f32 %v2680_v26, %v2679_v24  ;;  %v2686_v53 = vsel %vm2656_vm2, %v2415_v29, 0.0 }
 0x101   :  { %v2682_v30 = vsel %vm2656_vm2, %v2413_v27, 0.0  ;;  %v3869_v31 = vpop.f32.mrb[16].mxu0  ;;  %v4919_v2 = vpop.f32.mrb[16].mxu1 }
 0x102   :  { %v2683_v33 = vadd.f32 %v2682_v30, %v2681_v28  ;;  %v1441_v35 = vpop.f32.mrb[17].mxu0  ;;  %v1450_v42 = vadd.f32 %v3869_v31, %v4771_v50  ;;  %v4924_v8 = vpop.f32.mrb[17].mxu1 }
 0x103   :  { %v1442_v43 = vadd.f32 %v4771_v50, %v1441_v35  ;;  %v3870_v44 = vpop.f32.mrb[18].mxu0  ;;  %v4929_v15 = vpop.f32.mrb[18].mxu1 }
 0x104   :  { %v2685_v48 = vadd.f32 %v2684_v41, %v2683_v33  ;;  %v1444_v49 = vpop.f32.mrb[19].mxu0  ;;  %v1453_v55 = vadd.f32 %v3870_v44, %v4771_v50  ;;  %v2418_v58 = vmax.f32 %v1450_v42, 0.0  ;;  %v4931_v20 = vpop.f32.mrb[19].mxu1 }
 0x105   :  { %v2416_v54 = vmax.f32 %v1442_v43, 0.0  ;;  %v1445_v56 = vadd.f32 %v4771_v50, %v1444_v49 }
 0x106   :  { %v2687_v57 = vadd.f32 %v2686_v53, %v2685_v48  ;;  %3976 = vmatmul.mubr.msk.bf16.gmra.mrb[124].mxu0 %vm954_vm0, %v4256_v37  ;;  %v2419_v62 = vmax.f32 %v1453_v55, 0.0  ;;  %v2692_v9 = vsel %vm2656_vm2, %v2418_v58, 0.0 }
 0x107   :  { %v2688_v59 = vsel %vm2656_vm2, %v2416_v54, 0.0  ;;  %v2417_v60 = vmax.f32 %v1445_v56, 0.0  ;;  %3979 = vmatprep.mubr.msk.bf16.mxu0 %vm954_vm0, %v4259_v45 }
 0x108   :  { %v2689_v61 = vadd.f32 %v2688_v59, %v2687_v57  ;;  %v2694_v22 = vsel %vm2656_vm2, %v2419_v62, 0.0 }
 0x109   :  { %v2690_v63 = vsel %vm2656_vm2, %v2417_v60, 0.0  ;;  %v3873_v1 = vpop.f32.mrb[20].mxu0  ;;  %v4939_v37 = vpop.f32.mrb[20].mxu1 }
 0x10a   :  { %v2691_v3 = vadd.f32 %v2690_v63, %v2689_v61  ;;  %v1457_v4 = vpop.f32.mrb[21].mxu0  ;;  %v1466_v10 = vadd.f32 %v3873_v1, %v4771_v50  ;;  %v4941_v42 = vpop.f32.mrb[21].mxu1 }
 0x10b   :  { %v1458_v12 = vadd.f32 %v4771_v50, %v1457_v4  ;;  %v3874_v14 = vpop.f32.mrb[22].mxu0  ;;  %v4946_v49 = vpop.f32.mrb[22].mxu1 }
 0x10c   :  { %v2693_v16 = vadd.f32 %v2692_v9, %v2691_v3  ;;  %v1460_v19 = vpop.f32.mrb[23].mxu0  ;;  %v1469_v24 = vadd.f32 %v3874_v14, %v4771_v50  ;;  %v2422_v27 = vmax.f32 %v1466_v10, 0.0  ;;  %v4948_v55 = vpop.f32.mrb[23].mxu1 }
 0x10d   :  { %v2420_v23 = vmax.f32 %v1458_v12, 0.0  ;;  %v1461_v25 = vadd.f32 %v4771_v50, %v1460_v19 }
 0x10e   :  { %v2695_v26 = vadd.f32 %v2694_v22, %v2693_v16  ;;  %3980 = vmatmul.mubr.msk.bf16.gmra.mrb[128].mxu0 %vm954_vm0, %v4260_v7  ;;  %v2423_v31 = vmax.f32 %v1469_v24, 0.0  ;;  %v2700_v43 = vsel %vm2656_vm2, %v2422_v27, 0.0 }
 0x10f   :  { %v2696_v28 = vsel %vm2656_vm2, %v2420_v23, 0.0  ;;  %v2421_v29 = vmax.f32 %v1461_v25, 0.0 }
 0x110   :  { %v2697_v30 = vadd.f32 %v2696_v28, %v2695_v26  ;;  %v2702_v56 = vsel %vm2656_vm2, %v2423_v31, 0.0 }
 0x111   :  { %v2698_v33 = vsel %vm2656_vm2, %v2421_v29, 0.0  ;;  %v3877_v35 = vpop.f32.mrb[24].mxu0  ;;  %v4955_v9 = vpop.f32.mrb[24].mxu1 }
 0x112   :  { %v2699_v38 = vadd.f32 %v2698_v33, %v2697_v30  ;;  %v1473_v41 = vpop.f32.mrb[25].mxu0  ;;  %v1482_v44 = vadd.f32 %v3877_v35, %v4771_v50  ;;  %5662 = vst [vmem:[#allocation3_spill] sm:$0xff] %v4955_v9  ;;  %v4957_v14 = vpop.f32.mrb[25].mxu1 }
 0x113   :  { %v1474_v45 = vadd.f32 %v4771_v50, %v1473_v41  ;;  %v3878_v48 = vpop.f32.mrb[26].mxu0  ;;  %v4962_v24 = vpop.f32.mrb[26].mxu1 }
 0x114   :  { %v2701_v53 = vadd.f32 %v2700_v43, %v2699_v38  ;;  %v1476_v54 = vpop.f32.mrb[27].mxu0  ;;  %v1485_v58 = vadd.f32 %v3878_v48, %v4771_v50  ;;  %v2426_v61 = vmax.f32 %v1482_v44, 0.0  ;;  %5663 = vst [vmem:[#allocation4_spill] sm:$0xff] %v4962_v24  ;;  %v4965_v28 = vpop.f32.mrb[27].mxu1 }
 0x115   :  { %v2424_v57 = vmax.f32 %v1474_v45, 0.0  ;;  %v1477_v59 = vadd.f32 %v4771_v50, %v1476_v54 }
 0x116   :  { %v2703_v60 = vadd.f32 %v2702_v56, %v2701_v53  ;;  %v2427_v3 = vmax.f32 %v1485_v58, 0.0  ;;  %v2708_v16 = vsel %vm2656_vm2, %v2426_v61, 0.0 }
 0x117   :  { %v2704_v62 = vsel %vm2656_vm2, %v2424_v57, 0.0  ;;  %v2425_v63 = vmax.f32 %v1477_v59, 0.0 }
 0x118   :  { %v2705_v1 = vadd.f32 %v2704_v62, %v2703_v60  ;;  %v2710_v29 = vsel %vm2656_vm2, %v2427_v3, 0.0 }
 0x119   :  { %v2706_v4 = vsel %vm2656_vm2, %v2425_v63, 0.0  ;;  %v3881_v7 = vpop.f32.mrb[28].mxu0  ;;  %v4013_v53 = vpop.f32.mrb[28].mxu1 }
 0x11a   :  { %v2707_v10 = vadd.f32 %v2706_v4, %v2705_v1  ;;  %v1489_v12 = vpop.f32.mrb[29].mxu0  ;;  %v1498_v19 = vadd.f32 %v3881_v7, %v4771_v50  ;;  %v2017_v58 = vpop.f32.mrb[29].mxu1  ;;  %v2026_v7 = vadd.f32 %v4013_v53, %v4771_v50 }
 0x11b   :  { %v1490_v22 = vadd.f32 %v4771_v50, %v1489_v12  ;;  %v3882_v23 = vpop.f32.mrb[30].mxu0  ;;  %v2018_v62 = vadd.f32 %v4771_v50, %v2017_v58  ;;  %v4014_v63 = vpop.f32.mrb[30].mxu1 }
 0x11c   :  { %v2709_v25 = vadd.f32 %v2708_v16, %v2707_v10  ;;  %v1501_v26 = vadd.f32 %v3882_v23, %v4771_v50  ;;  %v1492_v27 = vpop.f32.mrb[31].mxu0  ;;  %v2430_v35 = vmax.f32 %v1498_v19, 0.0  ;;  %v2020_v10 = vpop.f32.mrb[31].mxu1 }
 0x11d   :  { %v2428_v30 = vmax.f32 %v1490_v22, 0.0  ;;  %v1493_v31 = vadd.f32 %v4771_v50, %v1492_v27  ;;  %v2560_v27 = vmax.f32 %v2018_v62, 0.0 }
 0x11e   :  { %v2711_v33 = vadd.f32 %v2710_v29, %v2709_v25  ;;  %v2431_v44 = vmax.f32 %v1501_v26, 0.0  ;;  %v2716_v59 = vsel %vm2656_vm2, %v2430_v35, 0.0  ;;  %v2029_v25 = vadd.f32 %v4014_v63, %v4771_v50 }
 0x11f   :  { %v2712_v38 = vsel %vm2656_vm2, %v2428_v30, 0.0  ;;  %v2429_v41 = vmax.f32 %v1493_v31, 0.0  ;;  %v2562_v30 = vmax.f32 %v2026_v7, 0.0  ;;  %v2021_v31 = vadd.f32 %v4771_v50, %v2020_v10 }
 0x120   :  { %v2713_v43 = vadd.f32 %v2712_v38, %v2711_v33  ;;  %v2718_v1 = vsel %vm2656_vm2, %v2431_v44, 0.0 }
 0x121   :  { %v2714_v45 = vsel %vm2656_vm2, %v2429_v41, 0.0  ;;  %v3885_v48 = vpop.f32.mrb[32].mxu0  ;;  %v4017_v44 = vpop.f32.mrb[32].mxu1 }
 0x122   :  { %v2715_v54 = vadd.f32 %v2714_v45, %v2713_v43  ;;  %v1514_v56 = vadd.f32 %v3885_v48, %v4771_v50  ;;  %v1505_v57 = vpop.f32.mrb[33].mxu0  ;;  %v2042_v62 = vadd.f32 %v4017_v44, %v4771_v50 }
 0x123   :  { %v1506_v60 = vadd.f32 %v4771_v50, %v1505_v57  ;;  %v3886_v61 = vpop.f32.mrb[34].mxu0  ;;  %v2033_v57 = vpop.f32.mrb[33].mxu1 }
 0x124   :  { %v2717_v3 = vadd.f32 %v2716_v59, %v2715_v54  ;;  %v1508_v4 = vpop.f32.mrb[35].mxu0  ;;  %v2434_v12 = vmax.f32 %v1514_v56, 0.0  ;;  %v1517_v19 = vadd.f32 %v3886_v61, %v4771_v50  ;;  %v2563_v56 = vmax.f32 %v2029_v25, 0.0  ;;  %v4018_v63 = vpop.f32.mrb[34].mxu1 }
 0x125   :  { %v2432_v16 = vmax.f32 %v1506_v60, 0.0  ;;  %v1509_v22 = vadd.f32 %v4771_v50, %v1508_v4  ;;  %v3002_v60 = vsel %vm2656_vm2, %v2560_v27, 0.0  ;;  %v2561_v61 = vmax.f32 %v2021_v31, 0.0 }
 0x126   :  { %v2719_v23 = vadd.f32 %v2718_v1, %v2717_v3  ;;  %v2729_v33 = vsel %vm2656_vm2, %v2434_v12, 0.0  ;;  %v2435_v38 = vmax.f32 %v1517_v19, 0.0  ;;  %v2034_v10 = vadd.f32 %v4771_v50, %v2033_v57  ;;  %v2036_v12 = vpop.f32.mrb[35].mxu1 }
 0x127   :  { %v2433_v26 = vmax.f32 %v1509_v22, 0.0  ;;  %v2726_v35 = vsel %vm2656_vm2, %v2432_v16, 0.0  ;;  %v3005_v27 = vsel %vm2656_vm2, %v2562_v30, 0.0  ;;  %v2037_v30 = vadd.f32 %v4771_v50, %v2036_v12 }
 0x128   :  { %v2720_v29 = vrot.slane %v2719_v23, 4  ;;  %v2731_v16 = vsel %vm2656_vm2, %v2435_v38, 0.0 }
 0x129   :  { %v2727_v41 = vsel %vm2656_vm2, %v2433_v26, 0.0  ;;  %v3889_v43 = vpop.f32.mrb[36].mxu0 }
 0x12a   :  { %v2721_v45 = vadd.f32 %v2720_v29, %v2719_v23  ;;  %v2728_v48 = vadd.f32 %v2727_v41, %v2726_v35  ;;  %v1530_v53 = vadd.f32 %v3889_v43, %v4771_v50  ;;  %v1521_v54 = vpop.f32.mrb[37].mxu0  ;;  %v3003_v23 = vsel %vm2656_vm2, %v2561_v61, 0.0 }
 0x12b   :  { %v1522_v58 = vadd.f32 %v4771_v50, %v1521_v54  ;;  %v3890_v59 = vpop.f32.mrb[38].mxu0  ;;  %v3007_v29 = vsel %vm2656_vm2, %v2563_v56, 0.0  ;;  %v3004_v35 = vadd.f32 %v3003_v23, %v3002_v60  ;;  %v2566_v41 = vmax.f32 %v2042_v62, 0.0 }
 0x12c   :  { %v2722_v1 = vrot.slane %v2721_v45, 2  ;;  %v2730_v3 = vadd.f32 %v2729_v33, %v2728_v48  ;;  %v1533_v4 = vadd.f32 %v3890_v59, %v4771_v50  ;;  %v1524_v7 = vpop.f32.mrb[39].mxu0  ;;  %v2438_v25 = vmax.f32 %v1530_v53, 0.0  ;;  %v4021_v59 = vpop.f32.mrb[36].mxu1 }
 0x12d   :  { %v2436_v19 = vmax.f32 %v1522_v58, 0.0  ;;  %v1525_v22 = vadd.f32 %v4771_v50, %v1524_v7  ;;  %v2564_v48 = vmax.f32 %v2034_v10, 0.0  ;;  %v3006_v58 = vadd.f32 %v3005_v27, %v3004_v35 }
 0x12e   :  { %v2732_v26 = vadd.f32 %v2731_v16, %v2730_v3  ;;  %v4996_v43 = vadd.f32 %v2722_v1, %v2721_v45  ;;  %v2439_v38 = vmax.f32 %v1533_v4, 0.0  ;;  %v2045_v53 = vadd.f32 %v4018_v63, %v4771_v50  ;;  %v2049_v1 = vpop.f32.mrb[37].mxu1 }
 0x12f   :  { %v2733_v31 = vsel %vm2656_vm2, %v2436_v19, 0.0  ;;  %v2437_v33 = vmax.f32 %v1525_v22, 0.0  ;;  %v2737_v56 = vsel %vm2656_vm2, %v2438_v25, 0.0  ;;  %v3009_v45 = vsel %vm2656_vm2, %v2564_v48, 0.0  ;;  %v4022_v19 = vpop.f32.mrb[38].mxu1 }
 0x130   :  { %v2734_v44 = vadd.f32 %v2733_v31, %v2732_v26  ;;  %v3008_v7 = vadd.f32 %v3007_v29, %v3006_v58  ;;  %v2567_v10 = vmax.f32 %v2045_v53, 0.0  ;;  %v2565_v16 = vmax.f32 %v2037_v30, 0.0  ;;  %v2052_v26 = vpop.f32.mrb[39].mxu1 }
 0x131   :  { %v2735_v54 = vsel %vm2656_vm2, %v2437_v33, 0.0  ;;  %v3893_v57 = vpop.f32.mrb[40].mxu0  ;;  %v2724_v63 = vrot.slane %v4996_v43, 1  ;;  %v3013_v25 = vsel %vm2656_vm2, %v2566_v41, 0.0  ;;  %v2739_v27 = vsel %vm2656_vm2, %v2439_v38, 0.0 }
 0x132   :  { %v2736_v61 = vadd.f32 %v2735_v54, %v2734_v44  ;;  %v1546_v60 = vadd.f32 %v3893_v57, %v4771_v50  ;;  %v1537_v62 = vpop.f32.mrb[41].mxu0  ;;  %v3010_v35 = vadd.f32 %v3009_v45, %v3008_v7  ;;  %v3015_v48 = vsel %vm2656_vm2, %v2567_v10, 0.0  ;;  %v4025_v7 = vpop.f32.mrb[40].mxu1 }
 0x133   :  { %v1538_v3 = vadd.f32 %v4771_v50, %v1537_v62  ;;  %v3894_v4 = vpop.f32.mrb[42].mxu0  ;;  %v3011_v54 = vsel %vm2656_vm2, %v2565_v16, 0.0  ;;  %v2058_v30 = vadd.f32 %v4021_v59, %v4771_v50  ;;  %v2050_v38 = vadd.f32 %v4771_v50, %v2049_v1 }
 0x134   :  { %v2738_v12 = vadd.f32 %v2737_v56, %v2736_v61  ;;  %v1549_v22 = vadd.f32 %v3894_v4, %v4771_v50  ;;  %v1540_v23 = vpop.f32.mrb[43].mxu0  ;;  %v2442_v44 = vmax.f32 %v1546_v60, 0.0  ;;  %v3012_v53 = vadd.f32 %v3011_v54, %v3010_v35 }
 0x135   :  { %v2440_v31 = vmax.f32 %v1538_v3, 0.0  ;;  %v1541_v33 = vadd.f32 %v4771_v50, %v1540_v23  ;;  %v2061_v61 = vadd.f32 %v4022_v19, %v4771_v50  ;;  %v2570_v3 = vmax.f32 %v2058_v30, 0.0 }
 0x136   :  { %v2740_v29 = vadd.f32 %v2739_v27, %v2738_v12  ;;  %v2443_v56 = vmax.f32 %v1549_v22, 0.0  ;;  %v3014_v45 = vadd.f32 %v3013_v25, %v3012_v53  ;;  %v2053_v4 = vadd.f32 %v4771_v50, %v2052_v26  ;;  %v2065_v27 = vpop.f32.mrb[41].mxu1 }
 0x137   :  { %v2741_v57 = vsel %vm2656_vm2, %v2440_v31, 0.0  ;;  %v2441_v58 = vmax.f32 %v1541_v33, 0.0  ;;  %v2568_v23 = vmax.f32 %v2050_v38, 0.0  ;;  %v2571_v59 = vmax.f32 %v2061_v61, 0.0  ;;  %v4026_v35 = vpop.f32.mrb[42].mxu1 }
 0x138   :  { %v2742_v41 = vadd.f32 %v2741_v57, %v2740_v29  ;;  %v2745_v22 = vsel %vm2656_vm2, %v2442_v44, 0.0  ;;  %v3016_v31 = vadd.f32 %v3015_v48, %v3014_v45  ;;  %v2569_v33 = vmax.f32 %v2053_v4, 0.0 }
 0x139   :  { %v2743_v62 = vsel %vm2656_vm2, %v2441_v58, 0.0  ;;  %v3897_v60 = vpop.f32.mrb[44].mxu0  ;;  %v2747_v25 = vsel %vm2656_vm2, %v2443_v56, 0.0  ;;  %v3017_v57 = vsel %vm2656_vm2, %v2568_v23, 0.0  ;;  %v2068_v58 = vpop.f32.mrb[43].mxu1  ;;  %v3021_v44 = vsel %vm2656_vm2, %v2570_v3, 0.0 }
 0x13a   :  { %v2744_v10 = vadd.f32 %v2743_v62, %v2742_v41  ;;  %v1562_v16 = vadd.f32 %v3897_v60, %v4771_v50  ;;  %v1553_v12 = vpop.f32.mrb[45].mxu0  ;;  %v3018_v41 = vadd.f32 %v3017_v57, %v3016_v31  ;;  %v3023_v48 = vsel %vm2656_vm2, %v2571_v59, 0.0  ;;  %v4029_v31 = vpop.f32.mrb[44].mxu1 }
 0x13b   :  { %v1554_v1 = vadd.f32 %v4771_v50, %v1553_v12  ;;  %v3898_v19 = vpop.f32.mrb[46].mxu0  ;;  %v3019_v62 = vsel %vm2656_vm2, %v2569_v33, 0.0  ;;  %v2074_v4 = vadd.f32 %v4025_v7, %v4771_v50  ;;  %v2066_v23 = vadd.f32 %v4771_v50, %v2065_v27  ;;  %v2081_v57 = vpop.f32.mrb[45].mxu1 }
 0x13c   :  { %v2746_v29 = vadd.f32 %v2745_v22, %v2744_v10  ;;  %v1565_v26 = vadd.f32 %v3898_v19, %v4771_v50  ;;  %v1556_v54 = vpop.f32.mrb[47].mxu0  ;;  %v2446_v38 = vmax.f32 %v1562_v16, 0.0  ;;  %v3020_v45 = vadd.f32 %v3019_v62, %v3018_v41  ;;  %v4030_v41 = vpop.f32.mrb[46].mxu1 }
 0x13d   :  { %v2444_v53 = vmax.f32 %v1554_v1, 0.0  ;;  %v1557_v30 = vadd.f32 %v4771_v50, %v1556_v54  ;;  %v2077_v22 = vadd.f32 %v4026_v35, %v4771_v50  ;;  %v2574_v19 = vmax.f32 %v2074_v4, 0.0 }
 0x13e   :  { %v2748_v61 = vadd.f32 %v2747_v25, %v2746_v29  ;;  %v2447_v12 = vmax.f32 %v1565_v26, 0.0  ;;  %v3022_v1 = vadd.f32 %v3021_v44, %v3020_v45  ;;  %v2069_v59 = vadd.f32 %v4771_v50, %v2068_v58 }
 0x13f   :  { %v2749_v56 = vsel %vm2656_vm2, %v2444_v53, 0.0  ;;  %v2445_v60 = vmax.f32 %v1557_v30, 0.0  ;;  %v2572_v54 = vmax.f32 %v2066_v23, 0.0  ;;  %v2575_v7 = vmax.f32 %v2077_v22, 0.0 }
 0x140   :  { %v2750_v10 = vadd.f32 %v2749_v56, %v2748_v61  ;;  %v2753_v26 = vsel %vm2656_vm2, %v2446_v38, 0.0  ;;  %v3024_v53 = vadd.f32 %v3023_v48, %v3022_v1  ;;  %v2573_v30 = vmax.f32 %v2069_v59, 0.0 }
 0x141   :  { %v2751_v3 = vsel %vm2656_vm2, %v2445_v60, 0.0  ;;  %v3901_v16 = vpop.f32.mrb[48].mxu0  ;;  %v2755_v44 = vsel %vm2656_vm2, %v2447_v12, 0.0  ;;  %v3025_v56 = vsel %vm2656_vm2, %v2572_v54, 0.0  ;;  %v2084_v60 = vpop.f32.mrb[47].mxu1  ;;  %v3029_v38 = vsel %vm2656_vm2, %v2574_v19, 0.0 }
 0x142   :  { %v2752_v33 = vadd.f32 %v2751_v3, %v2750_v10  ;;  %v1578_v25 = vadd.f32 %v3901_v16, %v4771_v50  ;;  %v1569_v29 = vpop.f32.mrb[49].mxu0  ;;  %v3026_v10 = vadd.f32 %v3025_v56, %v3024_v53  ;;  %v3031_v48 = vsel %vm2656_vm2, %v2575_v7, 0.0  ;;  %v4033_v53 = vpop.f32.mrb[48].mxu1 }
 0x143   :  { %v1570_v27 = vadd.f32 %v4771_v50, %v1569_v29  ;;  %v3902_v35 = vpop.f32.mrb[50].mxu0  ;;  %v3027_v3 = vsel %vm2656_vm2, %v2573_v30, 0.0  ;;  %v2090_v59 = vadd.f32 %v4029_v31, %v4771_v50  ;;  %v2082_v54 = vadd.f32 %v4771_v50, %v2081_v57  ;;  %v2097_v56 = vpop.f32.mrb[49].mxu1 }
 0x144   :  { %v2754_v61 = vadd.f32 %v2753_v26, %v2752_v33  ;;  %v1581_v58 = vadd.f32 %v3902_v35, %v4771_v50  ;;  %v1572_v62 = vpop.f32.mrb[51].mxu0  ;;  %v2450_v23 = vmax.f32 %v1578_v25, 0.0  ;;  %v3028_v1 = vadd.f32 %v3027_v3, %v3026_v10  ;;  %v4034_v10 = vpop.f32.mrb[50].mxu1 }
 0x145   :  { %v2448_v45 = vmax.f32 %v1570_v27, 0.0  ;;  %v1573_v4 = vadd.f32 %v4771_v50, %v1572_v62  ;;  %v2093_v26 = vadd.f32 %v4030_v41, %v4771_v50  ;;  %v2578_v35 = vmax.f32 %v2090_v59, 0.0 }
 0x146   :  { %v2756_v22 = vadd.f32 %v2755_v44, %v2754_v61  ;;  %v2451_v29 = vmax.f32 %v1581_v58, 0.0  ;;  %v3030_v27 = vadd.f32 %v3029_v38, %v3028_v1  ;;  %v2085_v7 = vadd.f32 %v4771_v50, %v2084_v60 }
 0x147   :  { %v2757_v12 = vsel %vm2656_vm2, %v2448_v45, 0.0  ;;  %v2449_v16 = vmax.f32 %v1573_v4, 0.0  ;;  %v2576_v62 = vmax.f32 %v2082_v54, 0.0  ;;  %v2579_v31 = vmax.f32 %v2093_v26, 0.0 }
 0x148   :  { %v2758_v33 = vadd.f32 %v2757_v12, %v2756_v22  ;;  %v2761_v58 = vsel %vm2656_vm2, %v2450_v23, 0.0  ;;  %v3032_v45 = vadd.f32 %v3031_v48, %v3030_v27  ;;  %v2577_v4 = vmax.f32 %v2085_v7, 0.0 }
 0x149   :  { %v2759_v19 = vsel %vm2656_vm2, %v2449_v16, 0.0  ;;  %v3905_v25 = vpop.f32.mrb[52].mxu0  ;;  %v2763_v38 = vsel %vm2656_vm2, %v2451_v29, 0.0  ;;  %v3033_v12 = vsel %vm2656_vm2, %v2576_v62, 0.0  ;;  %v2100_v16 = vpop.f32.mrb[51].mxu1  ;;  %v3037_v23 = vsel %vm2656_vm2, %v2578_v35, 0.0 }
 0x14a   :  { %v2760_v30 = vadd.f32 %v2759_v19, %v2758_v33  ;;  %v1594_v44 = vadd.f32 %v3905_v25, %v4771_v50  ;;  %v1585_v61 = vpop.f32.mrb[53].mxu0  ;;  %v3034_v33 = vadd.f32 %v3033_v12, %v3032_v45  ;;  %v3039_v48 = vsel %vm2656_vm2, %v2579_v31, 0.0  ;;  %v4037_v45 = vpop.f32.mrb[52].mxu1 }
 0x14b   :  { %v1586_v57 = vadd.f32 %v4771_v50, %v1585_v61  ;;  %v3906_v41 = vpop.f32.mrb[54].mxu0  ;;  %v3035_v19 = vsel %vm2656_vm2, %v2577_v4, 0.0  ;;  %v2106_v7 = vadd.f32 %v4033_v53, %v4771_v50  ;;  %v2098_v62 = vadd.f32 %v4771_v50, %v2097_v56  ;;  %v2113_v12 = vpop.f32.mrb[53].mxu1 }
 0x14c   :  { %v2762_v22 = vadd.f32 %v2761_v58, %v2760_v30  ;;  %v1597_v60 = vadd.f32 %v3906_v41, %v4771_v50  ;;  %v1588_v3 = vpop.f32.mrb[55].mxu0  ;;  %v2454_v54 = vmax.f32 %v1594_v44, 0.0  ;;  %v3036_v27 = vadd.f32 %v3035_v19, %v3034_v33  ;;  %v4038_v33 = vpop.f32.mrb[54].mxu1 }
 0x14d   :  { %v2452_v1 = vmax.f32 %v1586_v57, 0.0  ;;  %v1589_v59 = vadd.f32 %v4771_v50, %v1588_v3  ;;  %v2109_v58 = vadd.f32 %v4034_v10, %v4771_v50  ;;  %v2582_v41 = vmax.f32 %v2106_v7, 0.0 }
 0x14e   :  { %v2764_v26 = vadd.f32 %v2763_v38, %v2762_v22  ;;  %v2455_v61 = vmax.f32 %v1597_v60, 0.0  ;;  %v3038_v57 = vadd.f32 %v3037_v23, %v3036_v27  ;;  %v2101_v31 = vadd.f32 %v4771_v50, %v2100_v16 }
 0x14f   :  { %v2765_v29 = vsel %vm2656_vm2, %v2452_v1, 0.0  ;;  %v2453_v25 = vmax.f32 %v1589_v59, 0.0  ;;  %v2580_v3 = vmax.f32 %v2098_v62, 0.0  ;;  %v2583_v53 = vmax.f32 %v2109_v58, 0.0 }
 0x150   :  { %v2766_v30 = vadd.f32 %v2765_v29, %v2764_v26  ;;  %v2769_v60 = vsel %vm2656_vm2, %v2454_v54, 0.0  ;;  %v3040_v1 = vadd.f32 %v3039_v48, %v3038_v57  ;;  %v2581_v59 = vmax.f32 %v2101_v31, 0.0 }
 0x151   :  { %v2767_v35 = vsel %vm2656_vm2, %v2453_v25, 0.0  ;;  %v3909_v44 = vpop.f32.mrb[56].mxu0  ;;  %v2771_v23 = vsel %vm2656_vm2, %v2455_v61, 0.0  ;;  %v3041_v29 = vsel %vm2656_vm2, %v2580_v3, 0.0  ;;  %v2116_v25 = vpop.f32.mrb[55].mxu1  ;;  %v3045_v54 = vsel %vm2656_vm2, %v2582_v41, 0.0 }
 0x152   :  { %v2768_v4 = vadd.f32 %v2767_v35, %v2766_v30  ;;  %v1610_v38 = vadd.f32 %v3909_v44, %v4771_v50  ;;  %v1601_v22 = vpop.f32.mrb[57].mxu0  ;;  %v3042_v30 = vadd.f32 %v3041_v29, %v3040_v1  ;;  %v3047_v48 = vsel %vm2656_vm2, %v2583_v53, 0.0  ;;  %v4041_v1 = vpop.f32.mrb[56].mxu1 }
 0x153   :  { %v1602_v56 = vadd.f32 %v4771_v50, %v1601_v22  ;;  %v3910_v10 = vpop.f32.mrb[58].mxu0  ;;  %v3043_v35 = vsel %vm2656_vm2, %v2581_v59, 0.0  ;;  %v2122_v31 = vadd.f32 %v4037_v45, %v4771_v50  ;;  %v2114_v3 = vadd.f32 %v4771_v50, %v2113_v12  ;;  %v2129_v29 = vpop.f32.mrb[57].mxu1 }
 0x154   :  { %v2770_v26 = vadd.f32 %v2769_v60, %v2768_v4  ;;  %v1613_v16 = vadd.f32 %v3910_v10, %v4771_v50  ;;  %v1604_v19 = vpop.f32.mrb[59].mxu0  ;;  %v2458_v62 = vmax.f32 %v1610_v38, 0.0  ;;  %v3044_v57 = vadd.f32 %v3043_v35, %v3042_v30  ;;  %v4042_v30 = vpop.f32.mrb[58].mxu1 }
 0x155   :  { %v2456_v27 = vmax.f32 %v1602_v56, 0.0  ;;  %v1605_v7 = vadd.f32 %v4771_v50, %v1604_v19  ;;  %v2125_v60 = vadd.f32 %v4038_v33, %v4771_v50  ;;  %v2586_v10 = vmax.f32 %v2122_v31, 0.0  ;;  %v5090_v31 = vld [vmem:[%s5653_s2] ss:$0 sm:$0xff] }
 0x156   :  { %v2772_v58 = vadd.f32 %v2771_v23, %v2770_v26  ;;  %v2459_v22 = vmax.f32 %v1613_v16, 0.0  ;;  %v3046_v56 = vadd.f32 %v3045_v54, %v3044_v57  ;;  %v2117_v53 = vadd.f32 %v4771_v50, %v2116_v25 }
 0x157   :  { %v2773_v61 = vsel %vm2656_vm2, %v2456_v27, 0.0  ;;  %v2457_v44 = vmax.f32 %v1605_v7, 0.0  ;;  %v2584_v19 = vmax.f32 %v2114_v3, 0.0  ;;  %v2587_v45 = vmax.f32 %v2125_v60, 0.0 }
 0x158   :  { %v2774_v4 = vadd.f32 %v2773_v61, %v2772_v58  ;;  %v2777_v16 = vsel %vm2656_vm2, %v2458_v62, 0.0  ;;  %v3048_v27 = vadd.f32 %v3047_v48, %v3046_v56  ;;  %v2585_v7 = vmax.f32 %v2117_v53, 0.0 }
 0x159   :  { %v2775_v41 = vsel %vm2656_vm2, %v2457_v44, 0.0  ;;  %v3913_v38 = vpop.f32.mrb[60].mxu0  ;;  %v2779_v54 = vsel %vm2656_vm2, %v2459_v22, 0.0  ;;  %v3049_v61 = vsel %vm2656_vm2, %v2584_v19, 0.0  ;;  %v2132_v44 = vpop.f32.mrb[59].mxu1  ;;  %v3053_v22 = vsel %vm2656_vm2, %v2586_v10, 0.0 }
 0x15a   :  { %v2776_v59 = vadd.f32 %v2775_v41, %v2774_v4  ;;  %v1626_v23 = vadd.f32 %v3913_v38, %v4771_v50  ;;  %v1617_v26 = vpop.f32.mrb[61].mxu0  ;;  %v3050_v48 = vadd.f32 %v3049_v61, %v3048_v27  ;;  %v3055_v3 = vsel %vm2656_vm2, %v2587_v45, 0.0  ;;  %v4045_v27 = vpop.f32.mrb[60].mxu1 }
 0x15b   :  { %v1618_v12 = vadd.f32 %v4771_v50, %v1617_v26  ;;  %v3914_v33 = vpop.f32.mrb[62].mxu0  ;;  %v3051_v60 = vsel %vm2656_vm2, %v2585_v7, 0.0  ;;  %v2138_v53 = vadd.f32 %v5090_v31, %v4041_v1  ;;  %v2130_v26 = vadd.f32 %v5090_v31, %v2129_v29 }
 0x15c   :  { %v2778_v58 = vadd.f32 %v2777_v16, %v2776_v59  ;;  %v2462_v25 = vmax.f32 %v1626_v23, 0.0  ;;  %v1620_v35 = vpop.f32.mrb[63].mxu0  ;;  %v1629_v50 = vadd.f32 %v5090_v31, %v3914_v33  ;;  %v3052_v56 = vadd.f32 %v3051_v60, %v3050_v48 }
 0x15d   :  { %v2460_v57 = vmax.f32 %v1618_v12, 0.0  ;;  %v1621_v62 = vadd.f32 %v5090_v31, %v1620_v35  ;;  %v2141_v19 = vadd.f32 %v5090_v31, %v4042_v30  ;;  %v2133_v33 = vadd.f32 %v5090_v31, %v2132_v44 }
 0x15e   :  { %v2780_v4 = vadd.f32 %v2779_v54, %v2778_v58  ;;  %v2785_v59 = vsel %vm2656_vm2, %v2462_v25, 0.0  ;;  %v2463_v16 = vmax.f32 %v1629_v50, 0.0  ;;  %v3054_v45 = vadd.f32 %v3053_v22, %v3052_v56  ;;  %v2145_v25 = vpop.f32.mrb[61].mxu1 }
 0x15f   :  { %v2781_v41 = vsel %vm2656_vm2, %v2460_v57, 0.0  ;;  %v2461_v38 = vmax.f32 %v1621_v62, 0.0  ;;  %v2590_v1 = vmax.f32 %v2138_v53, 0.0  ;;  %v2588_v35 = vmax.f32 %v2130_v26, 0.0  ;;  %v4046_v62 = vpop.f32.mrb[62].mxu1 }
 0x160   :  { %v2782_v23 = vadd.f32 %v2781_v41, %v2780_v4  ;;  %v3056_v57 = vadd.f32 %v3055_v3, %v3054_v45  ;;  %v2591_v30 = vmax.f32 %v2141_v19, 0.0  ;;  %v2589_v50 = vmax.f32 %v2133_v33, 0.0  ;;  %v2148_v41 = vpop.f32.mrb[63].mxu1 }
 0x161   :  { %v2783_v10 = vsel %vm2656_vm2, %v2461_v38, 0.0  ;;  %v3917_v12 = vpop.f32.mrb[64].mxu0  ;;  %v3057_v60 = vsel %vm2656_vm2, %v2588_v35, 0.0  ;;  %v2787_v38 = vsel %vm2656_vm2, %v2463_v16, 0.0  ;;  %v3061_v3 = vsel %vm2656_vm2, %v2590_v1, 0.0 }
 0x162   :  { %v2784_v7 = vadd.f32 %v2783_v10, %v2782_v23  ;;  %v1642_v54 = vadd.f32 %v5090_v31, %v3917_v12  ;;  %v1633_v58 = vpop.f32.mrb[65].mxu0  ;;  %v3058_v23 = vadd.f32 %v3057_v60, %v3056_v57  ;;  %v3059_v19 = vsel %vm2656_vm2, %v2589_v50, 0.0  ;;  %v4049_v57 = vpop.f32.mrb[64].mxu1 }
 0x163   :  { %v1634_v61 = vadd.f32 %v5090_v31, %v1633_v58  ;;  %v3918_v29 = vpop.f32.mrb[66].mxu0  ;;  %v3063_v16 = vsel %vm2656_vm2, %v2591_v30, 0.0  ;;  %v2157_v60 = vadd.f32 %v5090_v31, %v4046_v62 }
 0x164   :  { %v2786_v48 = vadd.f32 %v2785_v59, %v2784_v7  ;;  %v2466_v4 = vmax.f32 %v1642_v54, 0.0  ;;  %v1645_v22 = vadd.f32 %v5090_v31, %v3918_v29  ;;  %v1636_v44 = vpop.f32.mrb[67].mxu0  ;;  %v2725_v59 = vadd.f32 %v2724_v63, %v4996_v43 }
 0x165   :  { %v2464_v56 = vmax.f32 %v1634_v61, 0.0  ;;  %v1637_v53 = vadd.f32 %v5090_v31, %v1636_v44  ;;  %v3060_v45 = vadd.f32 %v3059_v19, %v3058_v23  ;;  %v2146_v54 = vadd.f32 %v5090_v31, %v2145_v25 }
 0x166   :  { %v2788_v26 = vadd.f32 %v2787_v38, %v2786_v48  ;;  %v2467_v10 = vmax.f32 %v1645_v22, 0.0  ;;  %v2798_v7 = vsel %vm2656_vm2, %v2466_v4, 0.0  ;;  %v2154_v29 = vadd.f32 %v5090_v31, %v4045_v27  ;;  %v5123_v22 = vpop.f32.mrb[65].mxu1 }
 0x167   :  { %v2465_v12 = vmax.f32 %v1637_v53, 0.0  ;;  %v2795_v58 = vsel %vm2656_vm2, %v2464_v56, 0.0  ;;  %v3062_v61 = vadd.f32 %v3061_v3, %v3060_v45  ;;  %v2149_v38 = vadd.f32 %v5090_v31, %v2148_v41  ;;  %v4050_v27 = vpop.f32.mrb[66].mxu1 }
 0x168   :  { %v2789_v33 = vrot.slane %v2788_v26, 4  ;;  %v2800_v43 = vsel %vm2656_vm2, %v2467_v10, 0.0  ;;  %v2592_v10 = vmax.f32 %v2146_v54, 0.0  ;;  %v2164_v3 = vpop.f32.mrb[67].mxu1  ;;  %v3209_v54 = vmul.f32 0.00390625, %v2725_v59 }
 0x169   :  { %v2796_v35 = vsel %vm2656_vm2, %v2465_v12, 0.0  ;;  %v3921_v1 = vpop.f32.mrb[68].mxu0  ;;  %v5126_v44 = vadd.f32 %v3063_v16, %v3062_v61 }
 0x16a   :  { %v2790_v50 = vadd.f32 %v2789_v33, %v2788_v26  ;;  %v2797_v63 = vadd.f32 %v2796_v35, %v2795_v58  ;;  %v1658_v48 = vadd.f32 %v5090_v31, %v3921_v1  ;;  %v1649_v4 = vpop.f32.mrb[69].mxu0  ;;  %v2594_v33 = vmax.f32 %v2154_v29, 0.0 }
 0x16b   :  { %v1650_v25 = vadd.f32 %v5090_v31, %v1649_v4  ;;  %v3922_v30 = vpop.f32.mrb[70].mxu0  ;;  %5664 = vst [vmem:[#allocation5_spill] sm:$0xff] %v5126_v44  ;;  %v2595_v1 = vmax.f32 %v2157_v60, 0.0  ;;  %v2593_v4 = vmax.f32 %v2149_v38, 0.0 }
 0x16c   :  { %v2791_v56 = vrot.slane %v2790_v50, 2  ;;  %v2799_v53 = vadd.f32 %v2798_v7, %v2797_v63  ;;  %v1661_v23 = vadd.f32 %v5090_v31, %v3922_v30  ;;  %v1652_v26 = vpop.f32.mrb[71].mxu0  ;;  %v2470_v19 = vmax.f32 %v1658_v48, 0.0 }
 0x16d   :  { %v2468_v12 = vmax.f32 %v1650_v25, 0.0  ;;  %v1653_v45 = vadd.f32 %v5090_v31, %v1652_v26  ;;  %v3071_v63 = vsel %vm2656_vm2, %v2592_v10, 0.0  ;;  %v3074_v29 = vsel %vm2656_vm2, %v2594_v33, 0.0 }
 0x16e   :  { %v2792_v58 = vadd.f32 %v2791_v56, %v2790_v50  ;;  %v2801_v16 = vadd.f32 %v2800_v43, %v2799_v53  ;;  %v2471_v35 = vmax.f32 %v1661_v23, 0.0  ;;  %v2806_v48 = vsel %vm2656_vm2, %v2470_v19, 0.0  ;;  %v4053_v50 = vpop.f32.mrb[68].mxu1 }
 0x16f   :  { %v2802_v62 = vsel %vm2656_vm2, %v2468_v12, 0.0  ;;  %v2469_v41 = vmax.f32 %v1653_v45, 0.0  ;;  %v3072_v60 = vsel %vm2656_vm2, %v2593_v4, 0.0  ;;  %v2177_v26 = vpop.f32.mrb[69].mxu1  ;;  %v3076_v19 = vsel %vm2656_vm2, %v2595_v1, 0.0 }
 0x170   :  { %v2793_v61 = vrot.slane %v2792_v58, 1  ;;  %v2803_v7 = vadd.f32 %v2802_v62, %v2801_v16  ;;  %v2808_v10 = vsel %vm2656_vm2, %v2471_v35, 0.0  ;;  %v3073_v12 = vadd.f32 %v3072_v60, %v3071_v63  ;;  %v4054_v45 = vpop.f32.mrb[70].mxu1 }
 0x171   :  { %v2804_v25 = vsel %vm2656_vm2, %v2469_v41, 0.0  ;;  %v3925_v30 = vpop.f32.mrb[72].mxu0  ;;  %v2170_v41 = vadd.f32 %v5090_v31, %v4049_v57  ;;  %v2162_v60 = vadd.f32 %v5090_v31, %v5123_v22 }
 0x172   :  { %v2794_v43 = vadd.f32 %v2793_v61, %v2792_v58  ;;  %v2805_v56 = vadd.f32 %v2804_v25, %v2803_v7  ;;  %v1674_v53 = vadd.f32 %v5090_v31, %v3925_v30  ;;  %v1665_v23 = vpop.f32.mrb[73].mxu0  ;;  %v2180_v61 = vpop.f32.mrb[71].mxu1  ;;  %v3075_v35 = vadd.f32 %v3074_v29, %v3073_v12 }
 0x173   :  { %v1666_v59 = vadd.f32 %v5090_v31, %v1665_v23  ;;  %v3926_v38 = vpop.f32.mrb[74].mxu0  ;;  %v2173_v29 = vadd.f32 %v5090_v31, %v4050_v27 }
 0x174   :  { %v3210_v16 = vmul.f32 0.00390625, %v2794_v43  ;;  %v2807_v33 = vadd.f32 %v2806_v48, %v2805_v56  ;;  %v1677_v58 = vadd.f32 %v5090_v31, %v3926_v38  ;;  %v1668_v62 = vpop.f32.mrb[75].mxu0  ;;  %v2474_v7 = vmax.f32 %v1674_v53, 0.0 }
 0x175   :  { %v2472_v4 = vmax.f32 %v1666_v59, 0.0  ;;  %v1669_v25 = vadd.f32 %v5090_v31, %v1668_v62  ;;  %v2598_v56 = vmax.f32 %v2170_v41, 0.0  ;;  %v3077_v57 = vadd.f32 %v3076_v19, %v3075_v35 }
 0x176   :  { %v5146_v30 = vsel %vm3233_vm3, %v3210_v16, %v3209_v54  ;;  %v2809_v23 = vadd.f32 %v2808_v10, %v2807_v33  ;;  %v2475_v1 = vmax.f32 %v1677_v58, 0.0  ;;  %v2814_v53 = vsel %vm2656_vm2, %v2474_v7, 0.0  ;;  %v4057_v10 = vpop.f32.mrb[72].mxu1 }
 0x177   :  { %v2810_v63 = vsel %vm2656_vm2, %v2472_v4, 0.0  ;;  %v2473_v43 = vmax.f32 %v1669_v25, 0.0  ;;  %v2165_v54 = vadd.f32 %v5090_v31, %v2164_v3  ;;  %v2596_v62 = vmax.f32 %v2162_v60, 0.0  ;;  %v5157_v41 = vpop.f32.mrb[73].mxu1 }
 0x178   :  { %v2811_v48 = vadd.f32 %v2810_v63, %v2809_v23  ;;  %v2816_v12 = vsel %vm2656_vm2, %v2475_v1, 0.0  ;;  %v2599_v7 = vmax.f32 %v2173_v29, 0.0  ;;  %v2178_v25 = vadd.f32 %v5090_v31, %v2177_v26  ;;  %v4058_v27 = vpop.f32.mrb[74].mxu1 }
 0x179   :  { %v2812_v59 = vsel %vm2656_vm2, %v2473_v43, 0.0  ;;  %v3929_v38 = vpop.f32.mrb[76].mxu0  ;;  %v2597_v4 = vmax.f32 %v2165_v54, 0.0  ;;  %v3078_v63 = vsel %vm2656_vm2, %v2596_v62, 0.0  ;;  %v2196_v43 = vpop.f32.mrb[75].mxu1  ;;  %v3082_v29 = vsel %vm2656_vm2, %v2598_v56, 0.0 }
 0x17a   :  { %v2813_v16 = vadd.f32 %v2812_v59, %v2811_v48  ;;  %v1690_v33 = vadd.f32 %v5090_v31, %v3929_v38  ;;  %v1681_v58 = vpop.f32.mrb[77].mxu0  ;;  %v3079_v59 = vadd.f32 %v3078_v63, %v3077_v57  ;;  %v2186_v38 = vadd.f32 %v5090_v31, %v4053_v50 }
 0x17b   :  { %v1682_v22 = vadd.f32 %v5090_v31, %v1681_v58  ;;  %v3930_v19 = vpop.f32.mrb[78].mxu0  ;;  %v3084_v26 = vsel %vm2656_vm2, %v2599_v7, 0.0  ;;  %v2600_v36 = vmax.f32 %v2178_v25, 0.0  ;;  %v2189_v57 = vadd.f32 %v5090_v31, %v4054_v45 }
 0x17c   :  { %v2815_v35 = vadd.f32 %v2814_v53, %v2813_v16  ;;  %v2478_v3 = vmax.f32 %v1690_v33, 0.0  ;;  %v1693_v23 = vadd.f32 %v5090_v31, %v3930_v19  ;;  %v1684_v1 = vpop.f32.mrb[79].mxu0  ;;  %v3080_v53 = vsel %vm2656_vm2, %v2597_v4, 0.0 }
 0x17d   :  { %v2476_v48 = vmax.f32 %v1682_v22, 0.0  ;;  %v1685_v60 = vadd.f32 %v5090_v31, %v1684_v1  ;;  %v3081_v19 = vadd.f32 %v3080_v53, %v3079_v59  ;;  %v2602_v56 = vmax.f32 %v2186_v38, 0.0  ;;  %v4061_v1 = vpop.f32.mrb[76].mxu1 }
 0x17e   :  { %v2817_v58 = vadd.f32 %v2816_v12, %v2815_v35  ;;  %v2479_v16 = vmax.f32 %v1693_v23, 0.0  ;;  %v2822_v62 = vsel %vm2656_vm2, %v2478_v3, 0.0  ;;  %v2181_v7 = vadd.f32 %v5090_v31, %v2180_v61  ;;  %v5175_v3 = vpop.f32.mrb[77].mxu1 }
 0x17f   :  { %v2818_v54 = vsel %vm2656_vm2, %v2476_v48, 0.0  ;;  %v2477_v33 = vmax.f32 %v1685_v60, 0.0  ;;  %v3083_v35 = vadd.f32 %v3082_v29, %v3081_v19  ;;  %v3086_v48 = vsel %vm2656_vm2, %v2600_v36, 0.0  ;;  %v4062_v38 = vpop.f32.mrb[78].mxu1 }
 0x180   :  { %v2819_v22 = vadd.f32 %v2818_v54, %v2817_v58  ;;  %v2603_v60 = vmax.f32 %v2189_v57, 0.0  ;;  %v2824_v25 = vsel %vm2656_vm2, %v2479_v16, 0.0  ;;  %v2601_v29 = vmax.f32 %v2181_v7, 0.0 }
 0x181   :  { %v2820_v50 = vsel %vm2656_vm2, %v2477_v33, 0.0  ;;  %v3933_v12 = vpop.f32.mrb[80].mxu0  ;;  %v3085_v58 = vadd.f32 %v3084_v26, %v3083_v35  ;;  %v2202_v19 = vadd.f32 %v5090_v31, %v4057_v10  ;;  %v3090_v26 = vsel %vm2656_vm2, %v2602_v56, 0.0 }
 0x182   :  { %v2821_v4 = vadd.f32 %v2820_v50, %v2819_v22  ;;  %v1706_v63 = vadd.f32 %v5090_v31, %v3933_v12  ;;  %v1697_v23 = vpop.f32.mrb[81].mxu0  ;;  %v2212_v22 = vpop.f32.mrb[79].mxu1  ;;  %v3088_v16 = vsel %vm2656_vm2, %v2601_v29, 0.0  ;;  %v3092_v35 = vsel %vm2656_vm2, %v2603_v60, 0.0 }
 0x183   :  { %v1698_v45 = vadd.f32 %v5090_v31, %v1697_v23  ;;  %v3934_v59 = vpop.f32.mrb[82].mxu0  ;;  %v3087_v50 = vadd.f32 %v3086_v48, %v3085_v58  ;;  %v2194_v10 = vadd.f32 %v5090_v31, %v5157_v41  ;;  %v2205_v48 = vadd.f32 %v5090_v31, %v4058_v27 }
 0x184   :  { %v2823_v53 = vadd.f32 %v2822_v62, %v2821_v4  ;;  %v2482_v61 = vmax.f32 %v1706_v63, 0.0  ;;  %v1709_v54 = vadd.f32 %v5090_v31, %v3934_v59  ;;  %v1700_v33 = vpop.f32.mrb[83].mxu0  ;;  %v2606_v59 = vmax.f32 %v2202_v19, 0.0 }
 0x185   :  { %v2480_v36 = vmax.f32 %v1698_v45, 0.0  ;;  %v1701_v57 = vadd.f32 %v5090_v31, %v1700_v33  ;;  %v3089_v4 = vadd.f32 %v3088_v16, %v3087_v50  ;;  %v2604_v56 = vmax.f32 %v2194_v10, 0.0 }
 0x186   :  { %v2825_v12 = vadd.f32 %v2824_v25, %v2823_v53  ;;  %v2483_v23 = vmax.f32 %v1709_v54, 0.0  ;;  %v2830_v63 = vsel %vm2656_vm2, %v2482_v61, 0.0  ;;  %v2197_v60 = vadd.f32 %v5090_v31, %v2196_v43  ;;  %v4065_v53 = vpop.f32.mrb[80].mxu1 }
 0x187   :  { %v2826_v62 = vsel %vm2656_vm2, %v2480_v36, 0.0  ;;  %v2481_v7 = vmax.f32 %v1701_v57, 0.0  ;;  %v3091_v29 = vadd.f32 %v3090_v26, %v3089_v4  ;;  %v2607_v57 = vmax.f32 %v2205_v48, 0.0  ;;  %v5194_v61 = vpop.f32.mrb[81].mxu1 }
 0x188   :  { %v2827_v45 = vadd.f32 %v2826_v62, %v2825_v12  ;;  %v2832_v54 = vsel %vm2656_vm2, %v2483_v23, 0.0  ;;  %v3094_v16 = vsel %vm2656_vm2, %v2604_v56, 0.0  ;;  %v2605_v12 = vmax.f32 %v2197_v60, 0.0  ;;  %v4066_v26 = vpop.f32.mrb[82].mxu1 }
 0x189   :  { %v2828_v25 = vsel %vm2656_vm2, %v2481_v7, 0.0  ;;  %v3937_v58 = vpop.f32.mrb[84].mxu0  ;;  %v3093_v50 = vadd.f32 %v3092_v35, %v3091_v29  ;;  %v2218_v4 = vadd.f32 %v5090_v31, %v4061_v1  ;;  %v2228_v10 = vpop.f32.mrb[83].mxu1  ;;  %v3098_v29 = vsel %vm2656_vm2, %v2606_v59, 0.0 }
 0x18a   :  { %v2829_v33 = vadd.f32 %v2828_v25, %v2827_v45  ;;  %v1722_v36 = vadd.f32 %v5090_v31, %v3937_v58  ;;  %v1713_v41 = vpop.f32.mrb[85].mxu0  ;;  %v3096_v58 = vsel %vm2656_vm2, %v2605_v12, 0.0  ;;  %v3100_v56 = vsel %vm2656_vm2, %v2607_v57, 0.0 }
 0x18b   :  { %v1714_v19 = vadd.f32 %v5090_v31, %v1713_v41  ;;  %v3938_v27 = vpop.f32.mrb[86].mxu0  ;;  %v3095_v25 = vadd.f32 %v3094_v16, %v3093_v50  ;;  %v2210_v1 = vadd.f32 %v5090_v31, %v5175_v3  ;;  %v2221_v50 = vadd.f32 %v5090_v31, %v4062_v38 }
 0x18c   :  { %v2831_v62 = vadd.f32 %v2830_v63, %v2829_v33  ;;  %v2486_v43 = vmax.f32 %v1722_v36, 0.0  ;;  %v1725_v7 = vadd.f32 %v5090_v31, %v3938_v27  ;;  %v1716_v23 = vpop.f32.mrb[87].mxu0  ;;  %v2610_v27 = vmax.f32 %v2218_v4, 0.0 }
 0x18d   :  { %v2484_v45 = vmax.f32 %v1714_v19, 0.0  ;;  %v1717_v48 = vadd.f32 %v5090_v31, %v1716_v23  ;;  %v3097_v33 = vadd.f32 %v3096_v58, %v3095_v25  ;;  %v2608_v59 = vmax.f32 %v2210_v1, 0.0 }
 0x18e   :  { %v2833_v41 = vadd.f32 %v2832_v54, %v2831_v62  ;;  %v2487_v35 = vmax.f32 %v1725_v7, 0.0  ;;  %v2838_v36 = vsel %vm2656_vm2, %v2486_v43, 0.0  ;;  %v2213_v57 = vadd.f32 %v5090_v31, %v2212_v22  ;;  %v4069_v62 = vpop.f32.mrb[84].mxu1 }
 0x18f   :  { %v2834_v63 = vsel %vm2656_vm2, %v2484_v45, 0.0  ;;  %v2485_v60 = vmax.f32 %v1717_v48, 0.0  ;;  %v3099_v12 = vadd.f32 %v3098_v29, %v3097_v33  ;;  %v2611_v48 = vmax.f32 %v2221_v50, 0.0  ;;  %v5213_v43 = vpop.f32.mrb[85].mxu1 }
 0x190   :  { %v2835_v19 = vadd.f32 %v2834_v63, %v2833_v41  ;;  %v2840_v7 = vsel %vm2656_vm2, %v2487_v35, 0.0  ;;  %v3102_v58 = vsel %vm2656_vm2, %v2608_v59, 0.0  ;;  %v2609_v41 = vmax.f32 %v2213_v57, 0.0  ;;  %v4070_v29 = vpop.f32.mrb[86].mxu1 }
 0x191   :  { %v2836_v54 = vsel %vm2656_vm2, %v2485_v60, 0.0  ;;  %v3941_v16 = vpop.f32.mrb[88].mxu0  ;;  %v3101_v25 = vadd.f32 %v3100_v56, %v3099_v12  ;;  %v2234_v33 = vadd.f32 %v5090_v31, %v4065_v53  ;;  %v2244_v1 = vpop.f32.mrb[87].mxu1  ;;  %v3106_v12 = vsel %vm2656_vm2, %v2610_v27, 0.0 }
 0x192   :  { %v2837_v23 = vadd.f32 %v2836_v54, %v2835_v19  ;;  %v1738_v45 = vadd.f32 %v5090_v31, %v3941_v16  ;;  %v1729_v3 = vpop.f32.mrb[89].mxu0  ;;  %v3104_v16 = vsel %vm2656_vm2, %v2609_v41, 0.0  ;;  %v3108_v59 = vsel %vm2656_vm2, %v2611_v48, 0.0 }
 0x193   :  { %v1730_v4 = vadd.f32 %v5090_v31, %v1729_v3  ;;  %v3942_v38 = vpop.f32.mrb[90].mxu0  ;;  %v3103_v54 = vadd.f32 %v3102_v58, %v3101_v25  ;;  %v2226_v53 = vadd.f32 %v5090_v31, %v5194_v61  ;;  %v2237_v25 = vadd.f32 %v5090_v31, %v4066_v26 }
 0x194   :  { %v2839_v63 = vadd.f32 %v2838_v36, %v2837_v23  ;;  %v2490_v22 = vmax.f32 %v1738_v45, 0.0  ;;  %v1741_v60 = vadd.f32 %v5090_v31, %v3942_v38  ;;  %v1732_v35 = vpop.f32.mrb[91].mxu0  ;;  %v2614_v38 = vmax.f32 %v2234_v33, 0.0 }
 0x195   :  { %v2488_v19 = vmax.f32 %v1730_v4, 0.0  ;;  %v1733_v50 = vadd.f32 %v5090_v31, %v1732_v35  ;;  %v3105_v23 = vadd.f32 %v3104_v16, %v3103_v54  ;;  %v2612_v27 = vmax.f32 %v2226_v53, 0.0 }
 0x196   :  { %v2841_v3 = vadd.f32 %v2840_v7, %v2839_v63  ;;  %v2491_v56 = vmax.f32 %v1741_v60, 0.0  ;;  %v2846_v45 = vsel %vm2656_vm2, %v2490_v22, 0.0  ;;  %v2229_v48 = vadd.f32 %v5090_v31, %v2228_v10  ;;  %v4073_v63 = vpop.f32.mrb[88].mxu1 }
 0x197   :  { %v2842_v36 = vsel %vm2656_vm2, %v2488_v19, 0.0  ;;  %v2489_v57 = vmax.f32 %v1733_v50, 0.0  ;;  %v3107_v41 = vadd.f32 %v3106_v12, %v3105_v23  ;;  %v2615_v50 = vmax.f32 %v2237_v25, 0.0  ;;  %v5232_v22 = vpop.f32.mrb[89].mxu1 }
 0x198   :  { %v2843_v4 = vadd.f32 %v2842_v36, %v2841_v3  ;;  %v2848_v60 = vsel %vm2656_vm2, %v2491_v56, 0.0  ;;  %v3110_v16 = vsel %vm2656_vm2, %v2612_v27, 0.0  ;;  %v2613_v3 = vmax.f32 %v2229_v48, 0.0  ;;  %v4074_v12 = vpop.f32.mrb[90].mxu1 }
 0x199   :  { %v2844_v7 = vsel %vm2656_vm2, %v2489_v57, 0.0  ;;  %v3945_v58 = vpop.f32.mrb[92].mxu0  ;;  %v3109_v54 = vadd.f32 %v3108_v59, %v3107_v41  ;;  %v2250_v23 = vadd.f32 %v5090_v31, %v4069_v62  ;;  %v2260_v53 = vpop.f32.mrb[91].mxu1  ;;  %v3114_v41 = vsel %vm2656_vm2, %v2614_v38, 0.0 }
 0x19a   :  { %v2845_v35 = vadd.f32 %v2844_v7, %v2843_v4  ;;  %v1754_v19 = vadd.f32 %v5090_v31, %v3945_v58  ;;  %v1745_v61 = vpop.f32.mrb[93].mxu0  ;;  %v3112_v58 = vsel %vm2656_vm2, %v2613_v3, 0.0  ;;  %v3116_v27 = vsel %vm2656_vm2, %v2615_v50, 0.0 }
 0x19b   :  { %v1746_v33 = vadd.f32 %v5090_v31, %v1745_v61  ;;  %v3946_v26 = vpop.f32.mrb[94].mxu0  ;;  %v3111_v7 = vadd.f32 %v3110_v16, %v3109_v54  ;;  %v2242_v62 = vadd.f32 %v5090_v31, %v5213_v43  ;;  %v2253_v54 = vadd.f32 %v5090_v31, %v4070_v29 }
 0x19c   :  { %v2847_v36 = vadd.f32 %v2846_v45, %v2845_v35  ;;  %v2494_v10 = vmax.f32 %v1754_v19, 0.0  ;;  %v1757_v57 = vadd.f32 %v5090_v31, %v3946_v26  ;;  %v1748_v56 = vpop.f32.mrb[95].mxu0  ;;  %v2618_v26 = vmax.f32 %v2250_v23, 0.0 }
 0x19d   :  { %v2492_v4 = vmax.f32 %v1746_v33, 0.0  ;;  %v1749_v25 = vadd.f32 %v5090_v31, %v1748_v56  ;;  %v3113_v35 = vadd.f32 %v3112_v58, %v3111_v7  ;;  %v2616_v38 = vmax.f32 %v2242_v62, 0.0 }
 0x19e   :  { %v2849_v61 = vadd.f32 %v2848_v60, %v2847_v36  ;;  %v2495_v59 = vmax.f32 %v1757_v57, 0.0  ;;  %v2854_v19 = vsel %vm2656_vm2, %v2494_v10, 0.0  ;;  %v2245_v50 = vadd.f32 %v5090_v31, %v2244_v1  ;;  %v5249_v36 = vpop.f32.mrb[92].mxu1 }
 0x19f   :  { %v2850_v45 = vsel %vm2656_vm2, %v2492_v4, 0.0  ;;  %v2493_v48 = vmax.f32 %v1749_v25, 0.0  ;;  %v3115_v3 = vadd.f32 %v3114_v41, %v3113_v35  ;;  %v2619_v10 = vmax.f32 %v2253_v54, 0.0  ;;  %v5253_v25 = vpop.f32.mrb[93].mxu1 }
 0x1a0   :  { %v2851_v33 = vadd.f32 %v2850_v45, %v2849_v61  ;;  %v2856_v57 = vsel %vm2656_vm2, %v2495_v59, 0.0  ;;  %v3118_v58 = vsel %vm2656_vm2, %v2616_v38, 0.0  ;;  %v2617_v61 = vmax.f32 %v2245_v50, 0.0  ;;  %v5257_v41 = vpop.f32.mrb[94].mxu1 }
 0x1a1   :  { %v2852_v60 = vsel %vm2656_vm2, %v2493_v48, 0.0  ;;  %v3949_v16 = vpop.f32.mrb[96].mxu0  ;;  %v3117_v7 = vadd.f32 %v3116_v27, %v3115_v3  ;;  %v2266_v35 = vadd.f32 %v5090_v31, %v4073_v63  ;;  %v5261_v62 = vpop.f32.mrb[95].mxu1  ;;  %v3122_v38 = vsel %vm2656_vm2, %v2618_v26, 0.0 }
 0x1a2   :  { %v2853_v56 = vadd.f32 %v2852_v60, %v2851_v33  ;;  %v1770_v43 = vadd.f32 %v5090_v31, %v3949_v16  ;;  %v1761_v4 = vpop.f32.mrb[97].mxu0  ;;  %v3120_v27 = vsel %vm2656_vm2, %v2617_v61, 0.0  ;;  %v2258_v63 = vadd.f32 %v5090_v31, %v5232_v22 }
 0x1a3   :  { %v1762_v29 = vadd.f32 %v5090_v31, %v1761_v4  ;;  %v3950_v23 = vpop.f32.mrb[98].mxu0  ;;  %v3119_v60 = vadd.f32 %v3118_v58, %v3117_v7  ;;  %v2269_v7 = vadd.f32 %v5090_v31, %v4074_v12 }
 0x1a4   :  { %v2855_v1 = vadd.f32 %v2854_v19, %v2853_v56  ;;  %v2498_v45 = vmax.f32 %v1770_v43, 0.0  ;;  %v1773_v59 = vadd.f32 %v5090_v31, %v3950_v23  ;;  %v1764_v48 = vpop.f32.mrb[99].mxu0  ;;  %v3124_v19 = vsel %vm2656_vm2, %v2619_v10, 0.0 }
 0x1a5   :  { %v2496_v33 = vmax.f32 %v1762_v29, 0.0  ;;  %v1765_v54 = vadd.f32 %v5090_v31, %v1764_v48  ;;  %v3121_v43 = vadd.f32 %v3120_v27, %v3119_v60  ;;  %v2622_v23 = vmax.f32 %v2266_v35, 0.0 }
 0x1a6   :  { %v2857_v16 = vadd.f32 %v2856_v57, %v2855_v1  ;;  %v2499_v3 = vmax.f32 %v1773_v59, 0.0  ;;  %v2867_v50 = vsel %vm2656_vm2, %v2498_v45, 0.0  ;;  %v2620_v26 = vmax.f32 %v2258_v63, 0.0  ;;  %v5274_v1 = vpop.f32.mrb[96].mxu1 }
 0x1a7   :  { %v2497_v56 = vmax.f32 %v1765_v54, 0.0  ;;  %v2864_v29 = vsel %vm2656_vm2, %v2496_v33, 0.0  ;;  %v3123_v61 = vadd.f32 %v3122_v38, %v3121_v43  ;;  %v2261_v10 = vadd.f32 %v5090_v31, %v2260_v53  ;;  %v5278_v33 = vpop.f32.mrb[97].mxu1 }
 0x1a8   :  { %v2858_v4 = vrot.slane %v2857_v16, 4  ;;  %v2869_v59 = vsel %vm2656_vm2, %v2499_v3, 0.0  ;;  %v3126_v27 = vsel %vm2656_vm2, %v2620_v26, 0.0  ;;  %v3130_v63 = vsel %vm2656_vm2, %v2622_v23, 0.0 }
 0x1a9   :  { %v2865_v57 = vsel %vm2656_vm2, %v2497_v56, 0.0  ;;  %v3953_v58 = vpop.f32.mrb[100].mxu0  ;;  %v3125_v60 = vadd.f32 %v3124_v19, %v3123_v61  ;;  %v2621_v38 = vmax.f32 %v2261_v10, 0.0  ;;  %v5282_v56 = vpop.f32.mrb[98].mxu1  ;;  %v5295_v23 = vadd.f32 %v5090_v31, %v4795_v6 }
 0x1aa   :  { %v2859_v45 = vadd.f32 %v2858_v4, %v2857_v16  ;;  %v2866_v48 = vadd.f32 %v2865_v57, %v2864_v29  ;;  %v1786_v22 = vadd.f32 %v5090_v31, %v3953_v58  ;;  %v1777_v54 = vpop.f32.mrb[101].mxu0  ;;  %v5286_v4 = vpop.f32.mrb[99].mxu1 }
 0x1ab   :  { %v1778_v12 = vadd.f32 %v5090_v31, %v1777_v54  ;;  %v3954_v35 = vpop.f32.mrb[102].mxu0  ;;  %v3127_v58 = vadd.f32 %v3126_v27, %v3125_v60  ;;  %v2623_v54 = vmax.f32 %v2269_v7, 0.0  ;;  %v5301_v27 = vpop.f32.mrb[100].mxu1 }
 0x1ac   :  { %v2860_v53 = vrot.slane %v2859_v45, 2  ;;  %v2868_v43 = vadd.f32 %v2867_v50, %v2866_v48  ;;  %v1789_v16 = vadd.f32 %v5090_v31, %v3954_v35  ;;  %v1780_v3 = vpop.f32.mrb[103].mxu0  ;;  %v2502_v61 = vmax.f32 %v1786_v22, 0.0 }
 0x1ad   :  { %v2500_v29 = vmax.f32 %v1778_v12, 0.0  ;;  %v1781_v57 = vadd.f32 %v5090_v31, %v1780_v3  ;;  %v3128_v50 = vsel %vm2656_vm2, %v2621_v38, 0.0  ;;  %v2282_v48 = vadd.f32 %v5090_v31, %v5249_v36 }
 0x1ae   :  { %v2861_v19 = vadd.f32 %v2860_v53, %v2859_v45  ;;  %v2870_v26 = vadd.f32 %v2869_v59, %v2868_v43  ;;  %v2503_v10 = vmax.f32 %v1789_v16, 0.0  ;;  %v3129_v60 = vadd.f32 %v3128_v50, %v3127_v58  ;;  %v5304_v16 = vpop.f32.mrb[101].mxu1 }
 0x1af   :  { %v2871_v44 = vsel %vm2656_vm2, %v2500_v29, 0.0  ;;  %v2501_v24 = vmax.f32 %v1781_v57, 0.0  ;;  %v3132_v59 = vsel %vm2656_vm2, %v2623_v54, 0.0  ;;  %v2274_v22 = vadd.f32 %v5090_v31, %v5253_v25  ;;  %v5309_v58 = vpop.f32.mrb[102].mxu1 }
 0x1b0   :  { %v2862_v12 = vrot.slane %v2861_v19, 1  ;;  %v2872_v35 = vadd.f32 %v2871_v44, %v2870_v26  ;;  %v3131_v43 = vadd.f32 %v3130_v63, %v3129_v60  ;;  %v2875_v44 = vsel %vm2656_vm2, %v2502_v61, 0.0  ;;  %v5314_v50 = vpop.f32.mrb[103].mxu1 }
 0x1b1   :  { %v2873_v7 = vsel %vm2656_vm2, %v2501_v24, 0.0  ;;  %v3957_v45 = vpop.f32.mrb[104].mxu0  ;;  %v2877_v24 = vsel %vm2656_vm2, %v2503_v10, 0.0  ;;  %v2626_v57 = vmax.f32 %v2282_v48, 0.0  ;;  %v2285_v63 = vadd.f32 %v5090_v31, %v5257_v41 }
 0x1b2   :  { %v2863_v38 = vadd.f32 %v2862_v12, %v2861_v19  ;;  %v2874_v36 = vadd.f32 %v2873_v7, %v2872_v35  ;;  %v1802_v53 = vadd.f32 %v5090_v31, %v3957_v45  ;;  %v1793_v6 = vpop.f32.mrb[105].mxu0  ;;  %v5317_v10 = vadd.f32 %v3132_v59, %v3131_v43 }
 0x1b3   :  { %v1794_v3 = vadd.f32 %v5090_v31, %v1793_v6  ;;  %v3958_v29 = vpop.f32.mrb[106].mxu0  ;;  %v2624_v35 = vmax.f32 %v2274_v22, 0.0  ;;  %v5321_v48 = vadd.f32 %v5090_v31, %v4803_v11  ;;  %v3143_v59 = vsel %vm2656_vm2, %v2626_v57, 0.0 }
 0x1b4   :  { %v3211_v25 = vmul.f32 0.00390625, %v2863_v38  ;;  %v2876_v54 = vadd.f32 %v2875_v44, %v2874_v36  ;;  %v1805_v19 = vadd.f32 %v5090_v31, %v3958_v29  ;;  %v1796_v26 = vpop.f32.mrb[107].mxu0  ;;  %5665 = vst [vmem:[#allocation6_spill] sm:$0xff] %v5317_v10  ;;  %v2506_v7 = vmax.f32 %v1802_v53, 0.0  ;;  %v5338_v29 = vpop.f32.mrb[104].mxu1 }
 0x1b5   :  { %v2504_v12 = vmax.f32 %v1794_v3, 0.0  ;;  %v1797_v61 = vadd.f32 %v5090_v31, %v1796_v26  ;;  %v2627_v22 = vmax.f32 %v2285_v63, 0.0  ;;  %v2277_v11 = vadd.f32 %v5090_v31, %v5261_v62  ;;  %v5342_v26 = vpop.f32.mrb[105].mxu1 }
 0x1b6   :  { %v5325_v60 = vsel %vm3235_vm4, %v3211_v25, %v5146_v30  ;;  %v2878_v45 = vadd.f32 %v2877_v24, %v2876_v54  ;;  %v2507_v36 = vmax.f32 %v1805_v19, 0.0  ;;  %v3140_v30 = vsel %vm2656_vm2, %v2624_v35, 0.0  ;;  %v5348_v35 = vpop.f32.mrb[106].mxu1 }
 0x1b7   :  { %v2879_v38 = vsel %vm2656_vm2, %v2504_v12, 0.0  ;;  %v2505_v6 = vmax.f32 %v1797_v61, 0.0  ;;  %v2298_v53 = vadd.f32 %v5090_v31, %v5274_v1  ;;  %v2290_v24 = vadd.f32 %v5090_v31, %v5278_v33 }
 0x1b8   :  { %v2880_v44 = vadd.f32 %v2879_v38, %v2878_v45  ;;  %v2883_v25 = vsel %vm2656_vm2, %v2506_v7, 0.0  ;;  %v2625_v62 = vmax.f32 %v2277_v11, 0.0  ;;  %v2885_v63 = vsel %vm2656_vm2, %v2507_v36, 0.0  ;;  %v5352_v11 = vpop.f32.mrb[107].mxu1 }
 0x1b9   :  { %v2881_v43 = vsel %vm2656_vm2, %v2505_v6, 0.0  ;;  %v3961_v3 = vpop.f32.mrb[108].mxu0  ;;  %v2628_v1 = vmax.f32 %v2290_v24, 0.0  ;;  %v2301_v33 = vadd.f32 %v5090_v31, %v5282_v56  ;;  %v5358_v56 = vadd.f32 %v5090_v31, %v4811_v17 }
 0x1ba   :  { %v2882_v57 = vadd.f32 %v2881_v43, %v2880_v44  ;;  %v1818_v54 = vadd.f32 %v5090_v31, %v3961_v3  ;;  %v1809_v19 = vpop.f32.mrb[109].mxu0  ;;  %v3141_v44 = vsel %vm2656_vm2, %v2625_v62, 0.0 }
 0x1bb   :  { %v1810_v12 = vadd.f32 %v5090_v31, %v1809_v19  ;;  %v3962_v61 = vpop.f32.mrb[110].mxu0  ;;  %v3142_v3 = vadd.f32 %v3141_v44, %v3140_v30  ;;  %v2630_v19 = vmax.f32 %v2298_v53, 0.0  ;;  %v3147_v30 = vsel %vm2656_vm2, %v2628_v1, 0.0 }
 0x1bc   :  { %v2884_v45 = vadd.f32 %v2883_v25, %v2882_v57  ;;  %v2510_v7 = vmax.f32 %v1818_v54, 0.0  ;;  %v1821_v38 = vadd.f32 %v5090_v31, %v3962_v61  ;;  %v1812_v6 = vpop.f32.mrb[111].mxu0  ;;  %v3145_v57 = vsel %vm2656_vm2, %v2627_v22, 0.0 }
 0x1bd   :  { %v2508_v43 = vmax.f32 %v1810_v12, 0.0  ;;  %v1813_v36 = vadd.f32 %v5090_v31, %v1812_v6  ;;  %v3144_v41 = vadd.f32 %v3143_v59, %v3142_v3  ;;  %v2631_v53 = vmax.f32 %v2301_v33, 0.0 }
 0x1be   :  { %v2886_v25 = vadd.f32 %v2885_v63, %v2884_v45  ;;  %v2511_v61 = vmax.f32 %v1821_v38, 0.0  ;;  %v2891_v12 = vsel %vm2656_vm2, %v2510_v7, 0.0  ;;  %v3151_v17 = vsel %vm2656_vm2, %v2630_v19, 0.0  ;;  %v5368_v63 = vpop.f32.mrb[108].mxu1 }
 0x1bf   :  { %v2887_v54 = vsel %vm2656_vm2, %v2508_v43, 0.0  ;;  %v2509_v62 = vmax.f32 %v1813_v36, 0.0  ;;  %v3146_v24 = vadd.f32 %v3145_v57, %v3144_v41  ;;  %v2293_v22 = vadd.f32 %v5090_v31, %v5286_v4  ;;  %v5375_v33 = vpop.f32.mrb[109].mxu1 }
 0x1c0   :  { %v2888_v10 = vadd.f32 %v2887_v54, %v2886_v25  ;;  %v2314_v7 = vadd.f32 %v5090_v31, %v5301_v27  ;;  %v2306_v1 = vadd.f32 %v5090_v31, %v5304_v16  ;;  %v2893_v43 = vsel %vm2656_vm2, %v2511_v61, 0.0  ;;  %v5379_v19 = vpop.f32.mrb[110].mxu1  ;;  %v5387_v61 = vld [vmem:[%s5653_s2] ss:$0 sm:$0xff] }
 0x1c1   :  { %v2889_v6 = vsel %vm2656_vm2, %v2509_v62, 0.0  ;;  %v3965_v44 = vpop.f32.mrb[112].mxu0  ;;  %v3148_v4 = vadd.f32 %v3147_v30, %v3146_v24  ;;  %v2629_v3 = vmax.f32 %v2293_v22, 0.0  ;;  %v5382_v62 = vpop.f32.mrb[111].mxu1 }
 0x1c2   :  { %v2890_v45 = vadd.f32 %v2889_v6, %v2888_v10  ;;  %v1834_v59 = vadd.f32 %v5090_v31, %v3965_v44  ;;  %v1825_v38 = vpop.f32.mrb[113].mxu0  ;;  %v2634_v27 = vmax.f32 %v2314_v7, 0.0  ;;  %v2632_v30 = vmax.f32 %v2306_v1, 0.0 }
 0x1c3   :  { %v1826_v41 = vadd.f32 %v5090_v31, %v1825_v38  ;;  %v3966_v36 = vpop.f32.mrb[114].mxu0  ;;  %v3149_v24 = vsel %vm2656_vm2, %v2629_v3, 0.0  ;;  %v2317_v3 = vadd.f32 %v5387_v61, %v5309_v58 }
 0x1c4   :  { %v2892_v10 = vadd.f32 %v2891_v12, %v2890_v45  ;;  %v2514_v25 = vmax.f32 %v1834_v59, 0.0  ;;  %v1837_v57 = vadd.f32 %v5090_v31, %v3966_v36  ;;  %v1828_v54 = vpop.f32.mrb[115].mxu0  ;;  %v3153_v31 = vsel %vm2656_vm2, %v2631_v53, 0.0 }
 0x1c5   :  { %v2512_v16 = vmax.f32 %v1826_v41, 0.0  ;;  %v1829_v6 = vadd.f32 %v5387_v61, %v1828_v54  ;;  %v3150_v22 = vadd.f32 %v3149_v24, %v3148_v4  ;;  %v3159_v7 = vsel %vm2656_vm2, %v2634_v27, 0.0 }
 0x1c6   :  { %v2899_v12 = vsel %vm2656_vm2, %v2514_v25, 0.0  ;;  %v2894_v44 = vadd.f32 %v2893_v43, %v2892_v10  ;;  %v2515_v59 = vmax.f32 %v1837_v57, 0.0  ;;  %v3155_v9 = vsel %vm2656_vm2, %v2632_v30, 0.0  ;;  %v5405_v10 = vpop.f32.mrb[112].mxu1 }
 0x1c7   :  { %v2895_v45 = vsel %vm2656_vm2, %v2512_v16, 0.0  ;;  %v2513_v38 = vmax.f32 %v1829_v6, 0.0  ;;  %v3152_v36 = vadd.f32 %v3151_v17, %v3150_v22  ;;  %v2309_v53 = vadd.f32 %v5387_v61, %v5314_v50  ;;  %v5408_v16 = vpop.f32.mrb[113].mxu1 }
 0x1c8   :  { %v2896_v41 = vadd.f32 %v2895_v45, %v2894_v44  ;;  %v2330_v43 = vadd.f32 %v5387_v61, %v5338_v29  ;;  %v2322_v4 = vadd.f32 %v5387_v61, %v5342_v26  ;;  %v2635_v58 = vmax.f32 %v2317_v3, 0.0  ;;  %v5411_v29 = vpop.f32.mrb[114].mxu1 }
 0x1c9   :  { %v2897_v1 = vsel %vm2656_vm2, %v2513_v38, 0.0  ;;  %v3969_v25 = vpop.f32.mrb[116].mxu0  ;;  %v3154_v27 = vadd.f32 %v3153_v31, %v3152_v36  ;;  %v2633_v50 = vmax.f32 %v2309_v53, 0.0  ;;  %v2901_v31 = vsel %vm2656_vm2, %v2515_v59, 0.0 }
 0x1ca   :  { %v2898_v17 = vadd.f32 %v2897_v1, %v2896_v41  ;;  %v1850_v57 = vadd.f32 %v5387_v61, %v3969_v25  ;;  %v1841_v54 = vpop.f32.mrb[117].mxu0  ;;  %v2638_v30 = vmax.f32 %v2330_v43, 0.0  ;;  %v2636_v44 = vmax.f32 %v2322_v4, 0.0  ;;  %v5414_v1 = vpop.f32.mrb[115].mxu1 }
 0x1cb   :  { %v1842_v6 = vadd.f32 %v5387_v61, %v1841_v54  ;;  %v3970_v24 = vpop.f32.mrb[118].mxu0  ;;  %v3156_v41 = vadd.f32 %v3155_v9, %v3154_v27  ;;  %v3157_v25 = vsel %vm2656_vm2, %v2633_v50, 0.0  ;;  %v3161_v4 = vsel %vm2656_vm2, %v2635_v58, 0.0 }
 0x1cc   :  { %v2900_v22 = vadd.f32 %v2899_v12, %v2898_v17  ;;  %v2518_v26 = vmax.f32 %v1850_v57, 0.0  ;;  %v1853_v45 = vadd.f32 %v5387_v61, %v3970_v24  ;;  %v1844_v38 = vpop.f32.mrb[119].mxu0  ;;  %v3167_v9 = vsel %vm2656_vm2, %v2638_v30, 0.0  ;;  %v5433_v30 = vpop.f32.mrb[116].mxu1 }
 0x1cd   :  { %v2516_v36 = vmax.f32 %v1842_v6, 0.0  ;;  %v1845_v3 = vadd.f32 %v5387_v61, %v1844_v38  ;;  %v3158_v12 = vadd.f32 %v3157_v25, %v3156_v41  ;;  %v3163_v59 = vsel %vm2656_vm2, %v2636_v44, 0.0 }
 0x1ce   :  { %v2907_v53 = vsel %vm2656_vm2, %v2518_v26, 0.0  ;;  %v2902_v43 = vadd.f32 %v2901_v31, %v2900_v22  ;;  %v2519_v57 = vmax.f32 %v1853_v45, 0.0  ;;  %v2333_v6 = vadd.f32 %v5387_v61, %v5348_v35  ;;  %v5436_v31 = vpop.f32.mrb[117].mxu1 }
 0x1cf   :  { %v2903_v17 = vsel %vm2656_vm2, %v2516_v36, 0.0  ;;  %v2517_v54 = vmax.f32 %v1845_v3, 0.0  ;;  %v3160_v24 = vadd.f32 %v3159_v7, %v3158_v12  ;;  %v2325_v58 = vadd.f32 %v5387_v61, %v5352_v11 }
 0x1d0   :  { %v2904_v27 = vadd.f32 %v2903_v17, %v2902_v43  ;;  %v2346_v22 = vadd.f32 %v5387_v61, %v5368_v63  ;;  %v2338_v45 = vadd.f32 %v5387_v61, %v5375_v33  ;;  %v2639_v35 = vmax.f32 %v2333_v6, 0.0  ;;  %v5440_v43 = vpop.f32.mrb[118].mxu1 }
 0x1d1   :  { %v2905_v50 = vsel %vm2656_vm2, %v2517_v54, 0.0  ;;  %v3973_v26 = vpop.f32.mrb[120].mxu0  ;;  %v3162_v41 = vadd.f32 %v3161_v4, %v3160_v24  ;;  %v2909_v36 = vsel %vm2656_vm2, %v2519_v57, 0.0  ;;  %v2637_v25 = vmax.f32 %v2325_v58, 0.0 }
 0x1d2   :  { %v2906_v7 = vadd.f32 %v2905_v50, %v2904_v27  ;;  %v1866_v44 = vadd.f32 %v5387_v61, %v3973_v26  ;;  %v1857_v38 = vpop.f32.mrb[121].mxu0  ;;  %v2642_v63 = vmax.f32 %v2346_v22, 0.0  ;;  %v5443_v50 = vpop.f32.mrb[119].mxu1  ;;  %v2640_v6 = vmax.f32 %v2338_v45, 0.0 }
 0x1d3   :  { %v1858_v11 = vadd.f32 %v5387_v61, %v1857_v38  ;;  %v3974_v3 = vpop.f32.mrb[122].mxu0  ;;  %v3164_v27 = vadd.f32 %v3163_v59, %v3162_v41  ;;  %v3165_v57 = vsel %vm2656_vm2, %v2637_v25, 0.0  ;;  %v5666_v26 = vmax.f32 %v5295_v23, 0.0 }
 0x1d4   :  { %v2908_v33 = vadd.f32 %v2907_v53, %v2906_v7  ;;  %v2522_v12 = vmax.f32 %v1866_v44, 0.0  ;;  %v1869_v17 = vadd.f32 %v5387_v61, %v3974_v3  ;;  %v1860_v54 = vpop.f32.mrb[123].mxu0  ;;  %v3169_v53 = vsel %vm2656_vm2, %v2639_v35, 0.0 }
 0x1d5   :  { %v2520_v4 = vmax.f32 %v1858_v11, 0.0  ;;  %v1861_v24 = vadd.f32 %v5387_v61, %v1860_v54  ;;  %v5450_v58 = vsel %vm2656_vm2, %v5666_v26, 0.0  ;;  %v3166_v7 = vadd.f32 %v3165_v57, %v3164_v27 }
 0x1d6   :  { %v2910_v22 = vadd.f32 %v2909_v36, %v2908_v33  ;;  %v2915_v44 = vsel %vm2656_vm2, %v2522_v12, 0.0  ;;  %v2523_v38 = vmax.f32 %v1869_v17, 0.0  ;;  %v3175_v25 = vsel %vm2656_vm2, %v2642_v63, 0.0  ;;  %v5464_v12 = vpop.f32.mrb[120].mxu1 }
 0x1d7   :  { %v2911_v59 = vsel %vm2656_vm2, %v2520_v4, 0.0  ;;  %v2521_v41 = vmax.f32 %v1861_v24, 0.0  ;;  %v3168_v3 = vadd.f32 %v3167_v9, %v3166_v7  ;;  %v2349_v23 = vadd.f32 %v5387_v61, %v5379_v19  ;;  %v5469_v4 = vpop.f32.mrb[121].mxu1 }
 0x1d8   :  { %v2912_v11 = vadd.f32 %v2911_v59, %v2910_v22  ;;  %v3171_v36 = vsel %vm2656_vm2, %v2640_v6, 0.0  ;;  %v2341_v35 = vadd.f32 %v5387_v61, %v5382_v62  ;;  %v2354_v33 = vadd.f32 %v5387_v61, %v5408_v16  ;;  %v5473_v16 = vpop.f32.mrb[122].mxu1 }
 0x1d9   :  { %v2913_v45 = vsel %vm2656_vm2, %v2521_v41, 0.0  ;;  %v3977_v54 = vpop.f32.mrb[124].mxu0  ;;  %v3170_v27 = vadd.f32 %v3169_v53, %v3168_v3  ;;  %v2362_v19 = vadd.f32 %v5387_v61, %v5405_v10  ;;  %v2917_v24 = vsel %vm2656_vm2, %v2523_v38, 0.0 }
 0x1da   :  { %v2914_v17 = vadd.f32 %v2913_v45, %v2912_v11  ;;  %v1882_v9 = vadd.f32 %v5387_v61, %v3977_v54  ;;  %v1873_v63 = vpop.f32.mrb[125].mxu0  ;;  %v2643_v6 = vmax.f32 %v2349_v23, 0.0  ;;  %v2641_v26 = vmax.f32 %v2341_v35, 0.0  ;;  %v5476_v11 = vpop.f32.mrb[123].mxu1 }
 0x1db   :  { %v1874_v57 = vadd.f32 %v5387_v61, %v1873_v63  ;;  %v3978_v62 = vpop.f32.mrb[126].mxu0  ;;  %v3172_v53 = vadd.f32 %v3171_v36, %v3170_v27  ;;  %v2644_v45 = vmax.f32 %v2354_v33, 0.0  ;;  %v5667_v54 = vmax.f32 %v5321_v48, 0.0 }
 0x1dc   :  { %v2916_v22 = vadd.f32 %v2915_v44, %v2914_v17  ;;  %v2526_v7 = vmax.f32 %v1882_v9, 0.0  ;;  %v1885_v59 = vadd.f32 %v5387_v61, %v3978_v62  ;;  %v1876_v41 = vpop.f32.mrb[127].mxu0  ;;  %v3173_v38 = vsel %vm2656_vm2, %v2641_v26, 0.0 }
 0x1dd   :  { %v2524_v10 = vmax.f32 %v1874_v57, 0.0  ;;  %v1877_v3 = vadd.f32 %v5387_v61, %v1876_v41  ;;  %v5483_v23 = vsel %vm2656_vm2, %v5667_v54, 0.0  ;;  %v3174_v44 = vadd.f32 %v3173_v38, %v3172_v53 }
 0x1de   :  { %v2918_v35 = vadd.f32 %v2917_v24, %v2916_v22  ;;  %v2646_v17 = vmax.f32 %v2362_v19, 0.0  ;;  %v2923_v9 = vsel %vm2656_vm2, %v2526_v7, 0.0  ;;  %v3177_v27 = vsel %vm2656_vm2, %v2643_v6, 0.0 }
 0x1df   :  { %v2919_v36 = vsel %vm2656_vm2, %v2524_v10, 0.0  ;;  %v2525_v63 = vmax.f32 %v1877_v3, 0.0  ;;  %v2527_v62 = vmax.f32 %v1885_v59, 0.0  ;;  %v3176_v41 = vadd.f32 %v3175_v25, %v3174_v44 }
 0x1e0   :  { %v2920_v57 = vadd.f32 %v2919_v36, %v2918_v35  ;;  %v2365_v33 = vadd.f32 %v5387_v61, %v5411_v29  ;;  %v3179_v24 = vsel %vm2656_vm2, %v2644_v45, 0.0  ;;  %v2357_v19 = vadd.f32 %v5387_v61, %v5414_v1 }
 0x1e1   :  { %v2921_v48 = vsel %vm2656_vm2, %v2525_v63, 0.0  ;;  %v3981_v26 = vpop.f32.mrb[128].mxu0  ;;  %v2370_v22 = vadd.f32 %v5387_v61, %v5436_v31  ;;  %v3183_v6 = vsel %vm2656_vm2, %v2646_v17, 0.0  ;;  %v3178_v59 = vadd.f32 %v3177_v27, %v3176_v41 }
 0x1e2   :  { %v2922_v7 = vadd.f32 %v2921_v48, %v2920_v57  ;;  %v1889_v53 = vpop.f32.mrb[129].mxu0  ;;  %v2378_v25 = vadd.f32 %v5387_v61, %v5433_v30  ;;  %v1898_v29 = vadd.f32 %v5387_v61, %v3981_v26  ;;  %v2647_v38 = vmax.f32 %v2365_v33, 0.0 }
 0x1e3   :  { %v1890_v10 = vadd.f32 %v5387_v61, %v1889_v53  ;;  %v3982_v3 = vpop.f32.mrb[130].mxu0  ;;  %v2645_v45 = vmax.f32 %v2357_v19, 0.0  ;;  %v2925_v1 = vsel %vm2656_vm2, %v2527_v62, 0.0  ;;  %v3180_v44 = vadd.f32 %v3179_v24, %v3178_v59 }
 0x1e4   :  { %v2924_v54 = vadd.f32 %v2923_v9, %v2922_v7  ;;  %v1901_v31 = vadd.f32 %v5387_v61, %v3982_v3  ;;  %v1892_v35 = vpop.f32.mrb[131].mxu0  ;;  %v2648_v30 = vmax.f32 %v2370_v22, 0.0  ;;  %v1909_v27 = vadd.f32 %v5387_v61, %v4816_v21 }
 0x1e5   :  { %v2528_v36 = vmax.f32 %v1890_v10, 0.0  ;;  %v1893_v17 = vadd.f32 %v5387_v61, %v1892_v35  ;;  %v3181_v63 = vsel %vm2656_vm2, %v2645_v45, 0.0  ;;  %v2650_v33 = vmax.f32 %v2378_v25, 0.0 }
 0x1e6   :  { %v2926_v57 = vadd.f32 %v2925_v1, %v2924_v54  ;;  %v3182_v41 = vadd.f32 %v3181_v63, %v3180_v44  ;;  %v2530_v48 = vmax.f32 %v1898_v29, 0.0  ;;  %v2531_v26 = vmax.f32 %v1901_v31, 0.0 }
 0x1e7   :  { %v2529_v62 = vmax.f32 %v1893_v17, 0.0  ;;  %v3185_v9 = vsel %vm2656_vm2, %v2647_v38, 0.0  ;;  %v2933_v24 = vsel %vm2656_vm2, %v2528_v36, 0.0  ;;  %v2381_v53 = vadd.f32 %v5387_v61, %v5440_v43 }
 0x1e8   :  { %v2927_v19 = vrot.slane %v2926_v57, 4  ;;  %v3184_v7 = vadd.f32 %v3183_v6, %v3182_v41  ;;  %v3187_v59 = vsel %vm2656_vm2, %v2648_v30, 0.0  ;;  %v2373_v21 = vadd.f32 %v5387_v61, %v5443_v50 }
 0x1e9   :  { %v2934_v22 = vsel %vm2656_vm2, %v2529_v62, 0.0  ;;  %v2386_v25 = vadd.f32 %v5387_v61, %v5469_v4  ;;  %v2535_v29 = vmax.f32 %v5358_v56, 0.0  ;;  %v2533_v45 = vmax.f32 %v1909_v27, 0.0 }
 0x1ea   :  { %v2928_v10 = vadd.f32 %v2927_v19, %v2926_v57  ;;  %v2935_v3 = vadd.f32 %v2934_v22, %v2933_v24  ;;  %v3186_v38 = vadd.f32 %v3185_v9, %v3184_v7  ;;  %v2936_v6 = vsel %vm2656_vm2, %v2530_v48, 0.0 }
 0x1eb   :  { %v2651_v1 = vmax.f32 %v2381_v53, 0.0  ;;  %v2649_v43 = vmax.f32 %v2373_v21, 0.0  ;;  %v3191_v35 = vsel %vm2656_vm2, %v2650_v33, 0.0  ;;  %v2938_v50 = vsel %vm2656_vm2, %v2531_v26, 0.0 }
 0x1ec   :  { %v2929_v54 = vrot.slane %v2928_v10, 2  ;;  %v2937_v31 = vadd.f32 %v2936_v6, %v2935_v3  ;;  %v3188_v44 = vadd.f32 %v3187_v59, %v3186_v38  ;;  %v2394_v56 = vadd.f32 %v5387_v61, %v5464_v12 }
 0x1ed   :  { %v3189_v36 = vsel %vm2656_vm2, %v2649_v43, 0.0  ;;  %v2652_v4 = vmax.f32 %v2386_v25, 0.0  ;;  %v2389_v27 = vadd.f32 %v5387_v61, %v5476_v11  ;;  %v1922_v57 = vadd.f32 %v5387_v61, %v4835_v40 }
 0x1ee   :  { %v2930_v17 = vadd.f32 %v2929_v54, %v2928_v10  ;;  %v2939_v63 = vadd.f32 %v2938_v50, %v2937_v31  ;;  %v3190_v30 = vadd.f32 %v3189_v36, %v3188_v44  ;;  %v3193_v41 = vsel %vm2656_vm2, %v2651_v1, 0.0 }
 0x1ef   :  { %v2397_v33 = vadd.f32 %v5387_v61, %v5473_v16  ;;  %v2653_v12 = vmax.f32 %v2389_v27, 0.0  ;;  %v5668_v9 = vmov 0.0   ;;  %v2942_v19 = vsel %vm2656_vm2, %v2533_v45, 0.0 }
 0x1f0   :  { %v2931_v48 = vrot.slane %v2930_v17, 1  ;;  %v2941_v26 = vadd.f32 %v5483_v23, %v2939_v63  ;;  %v3192_v62 = vadd.f32 %v3191_v35, %v3190_v30  ;;  %4109 = vmatprep.mubr.msk.f32.mxu1 %vm4280_vm5, %v5668_v9  ;;  %v1925_v11 = vadd.f32 %v5387_v61, %v4848_v51 }
 0x1f1   :  { %v2654_v40 = vmax.f32 %v2394_v56, 0.0  ;;  %v3195_v24 = vsel %vm2656_vm2, %v2652_v4, 0.0  ;;  %v1930_v16 = vadd.f32 %v5387_v61, %v4827_v34  ;;  %v2536_v22 = vmax.f32 %v1922_v57, 0.0 }
 0x1f2   :  { %v2932_v7 = vadd.f32 %v2931_v48, %v2930_v17  ;;  %v2943_v53 = vadd.f32 %v2942_v19, %v2941_v26  ;;  %v3194_v23 = vadd.f32 %v3193_v41, %v3192_v62  ;;  %v2655_v59 = vmax.f32 %v2397_v33, 0.0 }
 0x1f3   :  { %v3197_v21 = vsel %vm2656_vm2, %v2653_v12, 0.0  ;;  %v2946_v51 = vsel %vm2656_vm2, %v2535_v29, 0.0  ;;  %v1933_v38 = vadd.f32 %v5387_v61, %v4843_v46  ;;  %v2537_v45 = vmax.f32 %v1925_v11, 0.0 }
 0x1f4   :  { %v3212_v25 = vmul.f32 0.00390625, %v2932_v7  ;;  %v2945_v10 = vadd.f32 %v5450_v58, %v2943_v53  ;;  %v3196_v3 = vadd.f32 %v3195_v24, %v3194_v23  ;;  %v3199_v34 = vsel %vm2656_vm2, %v2654_v40, 0.0 }
 0x1f5   :  { %v2538_v54 = vmax.f32 %v1930_v16, 0.0  ;;  %v2948_v31 = vsel %vm2656_vm2, %v2536_v22, 0.0  ;;  %v1938_v58 = vadd.f32 %v5387_v61, %v4867_v5  ;;  %v3201_v35 = vsel %vm2656_vm2, %v2655_v59, 0.0 }
 0x1f6   :  { %v2947_v6 = vadd.f32 %v2946_v51, %v2945_v10  ;;  %v3198_v1 = vadd.f32 %v3197_v21, %v3196_v3  ;;  %v5547_v43 = vsel %vm3237_vm6, %v3212_v25, %v5325_v60  ;;  %v2539_v50 = vmax.f32 %v1933_v38, 0.0 }
 0x1f7   :  { %v2950_v46 = vsel %vm2656_vm2, %v2537_v45, 0.0  ;;  %v1941_v36 = vadd.f32 %v5387_v61, %v4880_v18  ;;  %v2952_v60 = vsel %vm2656_vm2, %v2538_v54, 0.0  ;;  %v1946_v17 = vadd.f32 %v5387_v61, %v4859_v0 }
 0x1f8   :  { %v2949_v29 = vadd.f32 %v2948_v31, %v2947_v6  ;;  %v3200_v44 = vadd.f32 %v3199_v34, %v3198_v1  ;;  %v2540_v63 = vmax.f32 %v1938_v58, 0.0  ;;  %v2954_v30 = vsel %vm2656_vm2, %v2539_v50, 0.0 }
 0x1f9   :  { %v1949_v27 = vadd.f32 %v5387_v61, %v4875_v13  ;;  %v2541_v57 = vmax.f32 %v1941_v36, 0.0  ;;  %v2542_v33 = vmax.f32 %v1946_v17, 0.0  ;;  %v1954_v48 = vadd.f32 %v5387_v61, %v4899_v39 }
 0x1fa   :  { %v2951_v56 = vadd.f32 %v2950_v46, %v2949_v29  ;;  %v5556_v4 = vadd.f32 %v3201_v35, %v3200_v44  ;;  %v2956_v18 = vsel %vm2656_vm2, %v2540_v63, 0.0  ;;  %v1957_v0 = vadd.f32 %v5387_v61, %v4909_v52 }
 0x1fb   :  { %v2543_v62 = vmax.f32 %v1949_v27, 0.0  ;;  %v2958_v12 = vsel %vm2656_vm2, %v2541_v57, 0.0  ;;  %v2960_v11 = vsel %vm2656_vm2, %v2542_v33, 0.0  ;;  %v1962_v13 = vadd.f32 %v5387_v61, %v4891_v32  ;;  %v5669_v33 = vld [vmem:[#allocation3_spill] sm:$0xff] }
 0x1fc   :  { %v2953_v5 = vadd.f32 %v2952_v60, %v2951_v56  ;;  %v2544_v40 = vmax.f32 %v1954_v48, 0.0  ;;  %v1965_v39 = vadd.f32 %v5387_v61, %v4907_v47  ;;  %v2545_v7 = vmax.f32 %v1957_v0, 0.0  ;;  %v5671_v0 = vld [vmem:[#allocation5_spill] sm:$0xff] }
 0x1fd   :  { %v2962_v16 = vsel %vm2656_vm2, %v2543_v62, 0.0  ;;  %v2546_v23 = vmax.f32 %v1962_v13, 0.0  ;;  %v1970_v52 = vadd.f32 %v5387_v61, %v4924_v8  ;;  %v1973_v32 = vadd.f32 %v5387_v61, %v4931_v20  ;;  %v5670_v62 = vld [vmem:[#allocation4_spill] sm:$0xff] }
 0x1fe   :  { %v2955_v41 = vadd.f32 %v2954_v30, %v2953_v5  ;;  %v2964_v22 = vsel %vm2656_vm2, %v2544_v40, 0.0  ;;  %v2547_v21 = vmax.f32 %v1965_v39, 0.0  ;;  %v2966_v25 = vsel %vm2656_vm2, %v2545_v7, 0.0 }
 0x1ff   :  { %v2968_v3 = vsel %vm2656_vm2, %v2546_v23, 0.0  ;;  %v1978_v47 = vadd.f32 %v5387_v61, %v4919_v2  ;;  %v2548_v51 = vmax.f32 %v1970_v52, 0.0  ;;  %v1981_v8 = vadd.f32 %v5387_v61, %v4929_v15 }
 0x200   :  { %v2957_v26 = vadd.f32 %v2956_v18, %v2955_v41  ;;  %v2970_v45 = vsel %vm2656_vm2, %v2547_v21, 0.0  ;;  %v2549_v34 = vmax.f32 %v1973_v32, 0.0  ;;  %v1986_v20 = vadd.f32 %v5387_v61, %v4941_v42 }
 0x201   :  { %v2550_v1 = vmax.f32 %v1978_v47, 0.0  ;;  %v2972_v54 = vsel %vm2656_vm2, %v2548_v51, 0.0  ;;  %v2551_v58 = vmax.f32 %v1981_v8, 0.0  ;;  %v1989_v2 = vadd.f32 %v5387_v61, %v4948_v55 }
 0x202   :  { %v2959_v19 = vadd.f32 %v2958_v12, %v2957_v26  ;;  %v2974_v35 = vsel %vm2656_vm2, %v2549_v34, 0.0  ;;  %v1994_v15 = vadd.f32 %v5387_v61, %v4939_v37  ;;  %v2552_v50 = vmax.f32 %v1986_v20, 0.0 }
 0x203   :  { %v2976_v44 = vsel %vm2656_vm2, %v2550_v1, 0.0  ;;  %v2978_v36 = vsel %vm2656_vm2, %v2551_v58, 0.0  ;;  %v1997_v42 = vadd.f32 %v5387_v61, %v4946_v49  ;;  %v2553_v56 = vmax.f32 %v1989_v2, 0.0 }
 0x204   :  { %v2961_v24 = vadd.f32 %v2960_v11, %v2959_v19  ;;  %v2554_v17 = vmax.f32 %v1994_v15, 0.0  ;;  %v2980_v63 = vsel %vm2656_vm2, %v2552_v50, 0.0  ;;  %v2002_v55 = vadd.f32 %v5387_v61, %v4957_v14  ;;  %v5672_v11 = vld [vmem:[#allocation6_spill] sm:$0xff] }
 0x205   :  { %v2555_v30 = vmax.f32 %v1997_v42, 0.0  ;;  %v2982_v27 = vsel %vm2656_vm2, %v2553_v56, 0.0  ;;  %v2005_v37 = vadd.f32 %v5387_v61, %v4965_v28  ;;  %v2010_v49 = vadd.f32 %v5387_v61, %v5669_v33  ;;  %v3332_v33 = vld [vmem:[%s5655_s5 + $0x18] sm:$0xff] }
 0x206   :  { %v2963_v53 = vadd.f32 %v2962_v16, %v2961_v24  ;;  %v2984_v41 = vsel %vm2656_vm2, %v2554_v17, 0.0  ;;  %v2556_v18 = vmax.f32 %v2002_v55, 0.0  ;;  %v2013_v14 = vadd.f32 %v5387_v61, %v5670_v62  ;;  %v3702_v17 = vld [vmem:[%s5654_s4] ss:$0 sm:$0xff] }
 0x207   :  { %v2986_v26 = vsel %vm2656_vm2, %v2555_v30, 0.0  ;;  %v2557_v12 = vmax.f32 %v2005_v37, 0.0  ;;  %v3065_v19 = vrot.slane %v5671_v0, 4  ;;  %v3134_v13 = vrot.slane %v5672_v11, 4 }
 0x208   :  { %v2965_v59 = vadd.f32 %v2964_v22, %v2963_v53  ;;  %v2558_v28 = vmax.f32 %v2010_v49, 0.0  ;;  %v2988_v24 = vsel %vm2656_vm2, %v2556_v18, 0.0  ;;  %v3203_v16 = vrot.slane %v5556_v4, 4 }
 0x209   :  { %v2559_v7 = vmax.f32 %v2013_v14, 0.0  ;;  %v2990_v53 = vsel %vm2656_vm2, %v2557_v12, 0.0  ;;  %v3066_v23 = vadd.f32 %v3065_v19, %v5671_v0  ;;  %v3135_v22 = vadd.f32 %v3134_v13, %v5672_v11 }
 0x20a   :  { %v2967_v10 = vadd.f32 %v2966_v25, %v2965_v59  ;;  %v2992_v52 = vsel %vm2656_vm2, %v2558_v28, 0.0  ;;  %v3204_v59 = vadd.f32 %v3203_v16, %v5556_v4  ;;  %v4282_v18 = vmov 0  }
 0x20b   :  { %v2994_v25 = vsel %vm2656_vm2, %v2559_v7, 0.0  ;;  %v3067_v32 = vrot.slane %v3066_v23, 2  ;;  %4141 = vset.pattern.permute.xlu0 %v4282_v18  ;;  %v3426_v16 = vlaneseq }
 0x20c   :  { %v2969_v38 = vadd.f32 %v2968_v3, %v2967_v10  ;;  %v3136_v10 = vrot.slane %v3135_v22, 2  ;;  %v3205_v47 = vrot.slane %v3204_v59, 2 }
 0x20e   :  { %v2971_v6 = vadd.f32 %v2970_v45, %v2969_v38  ;;  %v3068_v38 = vadd.f32 %v3067_v32, %v3066_v23  ;;  %v3137_v45 = vadd.f32 %v3136_v10, %v3135_v22  ;;  %v3206_v34 = vadd.f32 %v3205_v47, %v3204_v59 }
 0x20f   :  { %v3427_v23 = vand.u32 127, %v3426_v16 }
 0x210   :  { %v2973_v31 = vadd.f32 %v2972_v54, %v2971_v6  ;;  %v3069_v1 = vrot.slane %v3068_v38, 1  ;;  %v3138_v54 = vrot.slane %v3137_v45, 1 }
 0x212   :  { %v2975_v29 = vadd.f32 %v2974_v35, %v2973_v31  ;;  %v3207_v31 = vrot.slane %v3206_v34, 1  ;;  %v3070_v35 = vadd.f32 %v3069_v1, %v3068_v38  ;;  %v3139_v4 = vadd.f32 %v3138_v54, %v3137_v45 }
 0x214   :  { %v2977_v46 = vadd.f32 %v2976_v44, %v2975_v29  ;;  %v3208_v29 = vadd.f32 %v3207_v31, %v3206_v34  ;;  %v3214_v15 = vmul.f32 0.00390625, %v3070_v35  ;;  %v3215_v50 = vmul.f32 0.00390625, %v3139_v4 }
 0x216   :  { %v2979_v60 = vadd.f32 %v2978_v36, %v2977_v46  ;;  %v3216_v36 = vmul.f32 0.00390625, %v3208_v29 }
 0x218   :  { %v2981_v5 = vadd.f32 %v2980_v63, %v2979_v60 }
 0x21a   :  { %v2983_v57 = vadd.f32 %v2982_v27, %v2981_v5  ;;  %v3329_v27 = vld [vmem:[%s5655_s5] sm:$0xff] }
 0x21c   :  { %v2985_v48 = vadd.f32 %v2984_v41, %v2983_v57  ;;  %v4281_v57 = vmov 0.0|0.0   ;;  %v3331_v41 = vld [vmem:[%s5655_s5 + $0x10] sm:$0xff] }
 0x21d   :  { %4123 = vmatprep.subr.bf16.mxu1 %v4281_v57  ;;  %v4127_v49 = vpack.c.bf16 %v3332_v33, %v3331_v41 }
 0x21e   :  { %v2987_v40 = vadd.f32 %v2986_v26, %v2985_v48  ;;  %v3430_v48 = vld [vmem:[%s5656_s6] sm:$0xff] }
 0x220   :  { %v2989_v39 = vadd.f32 %v2988_v24, %v2987_v40 }
 0x222   :  { %v2991_v61 = vadd.f32 %v2990_v53, %v2989_v39 }
 0x224   :  { %v2993_v21 = vadd.f32 %v2992_v52, %v2991_v61 }
 0x226   :  { %v2995_v3 = vadd.f32 %v2994_v25, %v2993_v21 }
 0x228   :  { %v2996_v51 = vrot.slane %v2995_v3, 4 }
 0x22a   :  { %v2997_v8 = vadd.f32 %v2996_v51, %v2995_v3 }
 0x22c   :  { %v2998_v6 = vrot.slane %v2997_v8, 2 }
 0x22e   :  { %v2999_v20 = vadd.f32 %v2998_v6, %v2997_v8 }
 0x230   :  { %v3000_v58 = vrot.slane %v2999_v20, 1 }
 0x232   :  { %v3001_v2 = vadd.f32 %v3000_v58, %v2999_v20 }
 0x234   :  { %v3213_v44 = vmul.f32 0.00390625, %v3001_v2 }
 0x236   :  { %v3240_v46 = vsel %vm3239_vm7, %v3213_v44, %v5547_v43 }
 0x237   :  { %v3242_v42 = vsel %vm3241_vm8, %v3214_v15, %v3240_v46 }
 0x238   :  { %v3244_v56 = vsel %vm3243_vm9, %v3215_v50, %v3242_v42 }
 0x239   :  { %v3246_v60 = vsel %vm3245_vm10, %v3216_v36, %v3244_v56 }
 0x23a   :  { %4110 = vmatmul.mubr.msk.f32.vlgmr.msra.gmra.mrb[124].mxu1 %vm2656_vm2, %v3246_v60 }
 0x23b   :  { %4120 = vmatprep.mubr.msk.f32.mxu1 %vm4280_vm5, %v5668_v9  ;;  %v3330_v9 = vld [vmem:[%s5655_s5 + $0x8] sm:$0xff] }
 0x23c   :  { %v4124_v37 = vpack.c.bf16 %v3330_v9, %v3329_v27 }
 0x23e   :  { %4125 = vmatpush3.bf16.msra.mxu1 %v4124_v37 }
 0x23f   :  { %4126 = vmatprep.subr.bf16.mxu1 %v4281_v57 }
 0x242   :  { %4128 = vmatpush3.bf16.msra.mxu1 %v4127_v49 }
 0x30d   :  { %v3315_v63 = vpop.f32.mrb[124].mxu1 }
 0x30e   :  { %v3316_v55 = vadd.f32 %v3702_v17, %v3315_v63  ;;  %v4111_v5 = vpop.f32.mrb[125].mxu1 }
 0x310   :  { %v3319_v30 = vmul.f32 %v3316_v55, %v3316_v55 }
 0x312   :  { %v3321_v43 = vsel %vm3320_vm11, %v3319_v30, 0.0 }
 0x313   :  { %3322 = vadd.xlane.f32.xlu0 %v3321_v43 }
 0x329   :  { %3432 = vperm.xlu0 %4141, %v3430_v48  }
 0x3a0   :  { %v3323_v26 = vpop.xlane.xlu0 %3322 }
 0x3a1   :  { %v3324_v62 = vadd.f32 1e-12, %v3323_v26 }
 0x3a3   :  { %4273 = vrsqrt.f32 %v3324_v62 }
 0x3a8   :  { %v3433_v61 = vpop.permute.xlu0 %3432 }
 0x3a9   :  { %vm3434_vm14 = vcmp.eq.s32.totalorder %v3427_v23, %v3433_v61 }
 0x3ad   :  { %v4274_v14 = vpop.eup %4273 }
 0x3ae   :  { %v3326_v12 = vmul.f32 %v4274_v14, %v3316_v55 }
 0x3b0   :  { %3327 = vst.msk [vmem:[#allocation2] sm:$0xff] %vm3320_vm11, %v3326_v12 }
 0x3b7   :  { %v3328_v0 = vld [vmem:[#allocation2] sm:$0xff] }
 0x3b8   :  { %4121 = vmatmul.mubr.msk.f32.vlgmr.msra.gmra.mrb[126].mxu1 %vm3320_vm11, %v3328_v0 }
 0x48b   :  { %v3403_v19 = vpop.f32.mrb[126].mxu1 }
 0x48c   :  { %v3705_v11 = vclamps-f32 %v3403_v19, 1.0  ;;  %v4122_v13 = vpop.f32.mrb[127].mxu1 }
 0x48e   :  { %v3409_v40 = vmul.f32 %v3705_v11, %v3705_v11  ;;  %v3419_v59 = vmul.f32 0.87758255, %v3705_v11  ;;  %v3706_v32 = vadd.f32 -0.23971277, %v3705_v11  ;;  %vm3422_vm15 = vcmp.gt.f32.partialorder %v3705_v11, -0.87758255 }
 0x490   :  { %v3410_v28 = vsub.f32 1.0, %v3409_v40 }
 0x492   :  { %v3411_v24 = vmax.f32 %v3410_v28, 0.0 }
 0x494   :  { %4275 = vrsqrt.f32 %v3411_v24  ;;  %vm3414_vm12 = vcmp.eq.f32.partialorder %v3411_v24, inf  ;;  %v3417_v53 = vand.u32 2147483648, %v3411_v24  ;;  %vm3416_vm13 = vcmp.eq.f32.partialorder %v3411_v24, 0.0 }
 0x49e   :  { %v4276_v39 = vpop.eup %4275 }
 0x49f   :  { %v3413_v7 = vmul.f32 %v4276_v39, %v3411_v24 }
 0x4a1   :  { %v3415_v22 = vsel %vm3414_vm12, %v3411_v24, %v3413_v7 }
 0x4a2   :  { %v3418_v52 = vsel %vm3416_vm13, %v3417_v53, %v3415_v22 }
 0x4a3   :  { %v3420_v21 = vmul.f32 0.47942555, %v3418_v52 }
 0x4a5   :  { %v3421_v25 = vsub.f32 %v3419_v59, %v3420_v21 }
 0x4a7   :  { %v3424_v10 = vsel %vm3422_vm15, %v3421_v25, %v3706_v32 }
 0x4a8   :  { %v3435_v3 = vsel %vm3434_vm14, %v3424_v10, %v3705_v11 }
 0x4a9   :  { %v3436_v47 = vmul.f32 64.0, %v3435_v3 }
 0x4ab   :  { %3437 = vst [vmem:[%s5657_s7] sm:$0xff] %v3436_v47 }

</bundles_post_ra>
